<compile_context>
chip_gen: v6e
topology: v6e:2x2x1
jax: 0.10.0
libtpu: 0.0.40
codegen_flags: <defaults>
</compile_context>

<pallas_src>
import functools

import jax
import jax.numpy as jnp
import numpy as np
from jax.experimental import pallas as pl
from jax.experimental.pallas import tpu as pltpu


def _pixelcnn_kernel(x_ref, w_ref, b_ref, g_ref, be_ref, sg_ref, sgt_ref,
                     o_ref, *, Nb, Ho, Kd, L, cnt, eps):
    """One grid step: Nb samples, whole image, lane-dense layout.

    x_ref  : (Nb, Ho, Kd)  bf16  row-im2col input, Kd = KHl*WpCp (mult. of 128)
    w_ref  : (Kd, L)       bf16  banded conv weight (all live kernel rows fused)
    b_ref  : (1, L)        f32   conv bias tiled to lanes (L = Wo*Cout)
    g_ref  : (1, L)        f32   GroupNorm gamma tiled to lanes
    be_ref : (1, L)        f32   GroupNorm beta tiled to lanes
    sg_ref : (L, G)        f32   0/1 lane -> group reduction matrix
    sgt_ref: (G, L)        f32   0/1 group -> lane broadcast matrix
    o_ref  : (Nb, Ho, L)   f32   lane-dense output
    """
    # ---- masked conv: one deep (Nb*Ho, Kd) @ (Kd, L) MXU matmul -------------
    rows = x_ref[...].reshape(Nb * Ho, Kd)        # leading-dim merge only (free)
    acc = jnp.dot(rows, w_ref[...], preferred_element_type=jnp.float32)
    acc = acc + b_ref[...]                        # (1, L) broadcast

    # ---- GroupNorm: one-pass stats (sum & sumsq), per sample ----------------
    acc3 = acc.reshape(Nb, Ho, L)
    s_lane = jnp.sum(acc3, axis=1)                                  # (Nb, L)
    ss_lane = jnp.sum(acc3 * acc3, axis=1)                          # (Nb, L)
    s_g = jnp.dot(s_lane, sg_ref[...], preferred_element_type=jnp.float32)
    ss_g = jnp.dot(ss_lane, sg_ref[...], preferred_element_type=jnp.float32)
    inv_cnt = 1.0 / cnt
    mean_g = s_g * inv_cnt                                          # (Nb, G)
    var_g = ss_g * inv_cnt - mean_g * mean_g
    inv_g = jax.lax.rsqrt(var_g + eps)
    mean_lane = jnp.dot(mean_g, sgt_ref[...],
                        preferred_element_type=jnp.float32)         # (Nb, L)
    inv_lane = jnp.dot(inv_g, sgt_ref[...],
                       preferred_element_type=jnp.float32)          # (Nb, L)

    scale = inv_lane * g_ref[...]                                   # (Nb, L)
    shift = be_ref[...] - mean_lane * scale                         # (Nb, L)

    # ---- affine + ReLU, lane-dense unmasked store ----------------------------
    # (At Nb*Ho >> 64 rows, chunk this epilogue over 8-16 rows to stay in vregs.)
    y = acc3 * scale[:, None, :] + shift[:, None, :]
    o_ref[...] = jnp.maximum(y, 0.0).astype(o_ref.dtype)


def _pick_nb(N, Ho, target_rows=256):
    """Batch-block size: largest divisor of N such that
       (a) the grid has >= 2 steps whenever N >= 2 (v7x has 2 TensorCores and
           a 1-step grid also kills pipeline overlap), and
       (b) Nb*Ho stays near the MXU-friendly target row count."""
    cap = max(1, target_rows // max(Ho, 1))
    if N >= 2:
        cap = min(cap, N // 2)
    cap = max(1, min(cap, N))
    return max(d for d in range(1, cap + 1) if N % d == 0)


def pixelcnn_block(x_nchw, conv_w, conv_b, gn_gamma, gn_beta,
                   *, kernel_size=7, padding=3, num_groups=32, eps=1e-5):
    N, Cin, H, W = x_nchw.shape
    Cout = conv_w.shape[0]
    assert Cout % num_groups == 0
    Cg = Cout // num_groups
    KH = KW = kernel_size
    Ho = H + 2 * padding - KH + 1
    Wo = W + 2 * padding - KW + 1
    Hp = H + 2 * padding
    Wp = W + 2 * padding
    WpC = Wp * Cin
    WpCp = -(-WpC // 128) * 128          # pad fused contraction width to lanes
    L = Wo * Cout
    KHl = KH // 2 + 1                    # kernel rows not fully zeroed by mask 'A'
    Kd = KHl * WpCp

    # --- mask 'A': zero centre tap and everything after it (raster order) ---
    mask = np.ones((Cout, Cin, KH, KW), np.float32)
    mask[:, :, KH // 2, KW // 2:] = 0.0
    mask[:, :, KH // 2 + 1:, :] = 0.0
    wm = conv_w.astype(jnp.float32) * jnp.asarray(mask)

    # --- banded (Toeplitz) weight, all live kernel rows fused along K --------
    # w_deep[kh*WpCp + (w+kw)*Cin + ci, w*Cout + co] = wm[co, ci, kh, kw]
    tap = np.zeros((KW, Wp, Wo), np.float32)
    for kw in range(KW):
        for w in range(Wo):
            tap[kw, w + kw, w] = 1.0
    w_big = jnp.einsum("qpw,oihq->hpiwo", jnp.asarray(tap), wm[:, :, :KHl, :])
    w_big = w_big.reshape(KHl, WpC, L)
    w_big = jnp.pad(w_big, ((0, 0), (0, WpCp - WpC), (0, 0)))
    w_deep = w_big.reshape(Kd, L).astype(jnp.bfloat16)

    # --- bias / gamma / beta tiled to the lane layout (lane = w*Cout + co) ---
    b_lane = jnp.tile(conv_b.astype(jnp.float32), Wo).reshape(1, L)
    g_lane = jnp.tile(gn_gamma.astype(jnp.float32), Wo).reshape(1, L)
    be_lane = jnp.tile(gn_beta.astype(jnp.float32), Wo).reshape(1, L)

    # --- 0/1 lane <-> group reduction / broadcast matrices -------------------
    group_of_c = np.repeat(np.arange(num_groups), Cg)               # (Cout,)
    sel = (group_of_c[:, None] == np.arange(num_groups)[None, :]).astype(np.float32)
    sg_np = np.tile(sel, (Wo, 1))                                   # (L, G)
    sg = jnp.asarray(sg_np)
    sgt = jnp.asarray(np.ascontiguousarray(sg_np.T))                # (G, L)

    # --- NCHW -> NHWC, pad, lane-pad, stack the KHl live-row views -----------
    # (Production: keep activations lane-dense between stacked blocks; these
    #  transposes are full-tensor HBM round trips kept only to honour the
    #  PyTorch NCHW interface.)
    x_nhwc = jnp.transpose(x_nchw, (0, 2, 3, 1)).astype(jnp.float32)
    xp = jnp.pad(x_nhwc, ((0, 0), (padding, padding), (padding, padding), (0, 0)))
    xp = xp.reshape(N, Hp, WpC)
    xp = jnp.pad(xp, ((0, 0), (0, 0), (0, WpCp - WpC)))
    # wrapper-side row-im2col: x_deep[:, ho, kh*WpCp + j] = xp[:, ho+kh, j]
    # -> the kernel never performs unaligned row slices / per-kh copies.
    x_deep = jnp.concatenate([xp[:, kh:kh + Ho, :] for kh in range(KHl)], axis=-1)
    x_deep = x_deep.astype(jnp.bfloat16)                            # (N, Ho, Kd)

    Nb = _pick_nb(N, Ho)

    kernel = functools.partial(
        _pixelcnn_kernel, Nb=Nb, Ho=Ho, Kd=Kd, L=L,
        cnt=float(Ho * Wo * Cg), eps=eps)

    out = pl.pallas_call(
        kernel,
        out_shape=jax.ShapeDtypeStruct((N, Ho, L), jnp.float32),
        grid_spec=pltpu.PrefetchScalarGridSpec(
            num_scalar_prefetch=0,
            grid=(N // Nb,),
            in_specs=[
                pl.BlockSpec((Nb, Ho, Kd), lambda n: (n, 0, 0)),
                pl.BlockSpec((Kd, L), lambda n: (0, 0)),
                pl.BlockSpec((1, L), lambda n: (0, 0)),
                pl.BlockSpec((1, L), lambda n: (0, 0)),
                pl.BlockSpec((1, L), lambda n: (0, 0)),
                pl.BlockSpec((L, num_groups), lambda n: (0, 0)),
                pl.BlockSpec((num_groups, L), lambda n: (0, 0)),
            ],
            out_specs=pl.BlockSpec((Nb, Ho, L), lambda n: (n, 0, 0)),
        ),
        compiler_params=pltpu.CompilerParams(
            dimension_semantics=("parallel",),
            # Safe ceiling on every generation at these tile sizes; raise to
            # ~64-96 MiB on v5e/v6e when Nb / image size is scaled up.
            vmem_limit_bytes=48 * 1024 * 1024),
    )(x_deep, w_deep, b_lane, g_lane, be_lane, sg, sgt)

    # (N, Ho, Wo*Cout) -> NCHW (the reshape is free; only the transpose costs).
    out = out.reshape(N, Ho, Wo, Cout)
    return jnp.transpose(out, (0, 3, 1, 2))


def _reference(x_nchw, conv_w, conv_b, gn_gamma, gn_beta,
               *, kernel_size=7, padding=3, num_groups=32, eps=1e-5):
    Cout, Cin, KH, KW = conv_w.shape
    mask = np.ones((Cout, Cin, KH, KW), np.float32)
    mask[:, :, KH // 2, KW // 2:] = 0.0
    mask[:, :, KH // 2 + 1:, :] = 0.0
    wm = conv_w * jnp.asarray(mask)
    out = jax.lax.conv_general_dilated(
        x_nchw, wm, window_strides=(1, 1),
        padding=[(padding, padding), (padding, padding)],
        dimension_numbers=("NCHW", "OIHW", "NCHW"))
    out = out + conv_b[None, :, None, None]
    N, C, H, W = out.shape
    o = out.reshape(N, num_groups, (C // num_groups) * H * W)
    mean = o.mean(axis=2, keepdims=True)
    var = ((o - mean) ** 2).mean(axis=2, keepdims=True)
    o = (o - mean) / jnp.sqrt(var + eps)
    o = o.reshape(N, C, H, W) * gn_gamma[None, :, None, None] + gn_beta[None, :, None, None]
    return jnp.maximum(o, 0.0)


if __name__ == "__main__":
    # PixelCNNBlock(in_channels=4, out_channels=32)  (GroupNorm needs Cout % 32 == 0)
    N, Cin, H, W = 2, 4, 16, 16
    Cout, K, P = 32, 7, 3

    key = jax.random.PRNGKey(0)
    k1, k2, k3, k4, k5 = jax.random.split(key, 5)
    x = jax.random.normal(k1, (N, Cin, H, W), jnp.float32)
    conv_w = 0.1 * jax.random.normal(k2, (Cout, Cin, K, K), jnp.float32)
    conv_b = 0.1 * jax.random.normal(k3, (Cout,), jnp.float32)
    gn_gamma = 1.0 + 0.1 * jax.random.normal(k4, (Cout,), jnp.float32)
    gn_beta = 0.1 * jax.random.normal(k5, (Cout,), jnp.float32)

    fn = jax.jit(functools.partial(pixelcnn_block, kernel_size=K, padding=P))
    out = fn(x, conv_w, conv_b, gn_gamma, gn_beta)
    out = jax.block_until_ready(out)

    ref = _reference(x, conv_w, conv_b, gn_gamma, gn_beta,
                     kernel_size=K, padding=P)
    # bf16 MXU operands (f32 accumulation) -> relaxed tolerance vs f32 reference.
    np.testing.assert_allclose(np.asarray(out), np.asarray(ref),
                               rtol=3e-2, atol=3e-2)
    print("KERNEL_OK")
</pallas_src>

<mosaic_0001>
module attributes {stable_mosaic.version = 11 : i64} {
  func.func @_pixelcnn_kernel(%arg0: i32, %arg1: memref<1x16x512xbf16, #tpu.memory_space<vmem>>, %arg2: memref<512x512xbf16, #tpu.memory_space<vmem>>, %arg3: memref<1x512xf32, #tpu.memory_space<vmem>>, %arg4: memref<1x512xf32, #tpu.memory_space<vmem>>, %arg5: memref<1x512xf32, #tpu.memory_space<vmem>>, %arg6: memref<512x32xf32, #tpu.memory_space<vmem>>, %arg7: memref<32x512xf32, #tpu.memory_space<vmem>>, %arg8: memref<1x16x512xf32, #tpu.memory_space<vmem>>) attributes {dimension_semantics = [#tpu.dimension_semantics<parallel>], iteration_bounds = array<i64: 2>, scalar_prefetch = 0 : i64, scratch_operands = 0 : i64, tpu.core_type = #tpu.core_type<tc>, window_params = [{transform_indices = @transform_0, window_bounds = array<i64: 1, 16, 512>}, {pipeline_mode = #tpu.pipeline_mode<synchronous>, transform_indices = @transform_1, window_bounds = array<i64: 512, 512>}, {pipeline_mode = #tpu.pipeline_mode<synchronous>, transform_indices = @transform_2, window_bounds = array<i64: 1, 512>}, {pipeline_mode = #tpu.pipeline_mode<synchronous>, transform_indices = @transform_3, window_bounds = array<i64: 1, 512>}, {pipeline_mode = #tpu.pipeline_mode<synchronous>, transform_indices = @transform_4, window_bounds = array<i64: 1, 512>}, {pipeline_mode = #tpu.pipeline_mode<synchronous>, transform_indices = @transform_5, window_bounds = array<i64: 512, 32>}, {pipeline_mode = #tpu.pipeline_mode<synchronous>, transform_indices = @transform_6, window_bounds = array<i64: 32, 512>}, {transform_indices = @transform_7, window_bounds = array<i64: 1, 16, 512>}]} {
    %c0 = arith.constant 0 : index
    %c0_0 = arith.constant 0 : index
    %c0_1 = arith.constant 0 : index
    %0 = vector.load %arg1[%c0, %c0_0, %c0_1] : memref<1x16x512xbf16, #tpu.memory_space<vmem>>, vector<1x16x512xbf16>
    %1 = vector.shape_cast %0 : vector<1x16x512xbf16> to vector<16x512xbf16>
    %c0_2 = arith.constant 0 : index
    %c0_3 = arith.constant 0 : index
    %2 = vector.load %arg2[%c0_2, %c0_3] : memref<512x512xbf16, #tpu.memory_space<vmem>>, vector<512x512xbf16>
    %cst = arith.constant dense<0.000000e+00> : vector<16x512xf32>
    %3 = tpu.matmul %1, %2, %cst {dimension_numbers = #tpu.dot_dimension_numbers<[1], [0], [0], [1], [0, 0, 1, 1], [], []>} : vector<16x512xbf16>, vector<512x512xbf16>, vector<16x512xf32> -> vector<16x512xf32>
    %c0_4 = arith.constant 0 : index
    %c0_5 = arith.constant 0 : index
    %4 = vector.load %arg3[%c0_4, %c0_5] : memref<1x512xf32, #tpu.memory_space<vmem>>, vector<1x512xf32>
    %5 = vector.broadcast %4 : vector<1x512xf32> to vector<16x512xf32>
    %6 = arith.addf %3, %5 : vector<16x512xf32>
    %7 = vector.shape_cast %6 : vector<16x512xf32> to vector<1x16x512xf32>
    %cst_6 = arith.constant dense<0.000000e+00> : vector<1x512xf32>
    %8 = vector.multi_reduction <add>, %7, %cst_6 [1] : vector<1x16x512xf32> to vector<1x512xf32>
    %9 = arith.mulf %7, %7 : vector<1x16x512xf32>
    %cst_7 = arith.constant dense<0.000000e+00> : vector<1x512xf32>
    %10 = vector.multi_reduction <add>, %9, %cst_7 [1] : vector<1x16x512xf32> to vector<1x512xf32>
    %c0_8 = arith.constant 0 : index
    %c0_9 = arith.constant 0 : index
    %11 = vector.load %arg6[%c0_8, %c0_9] : memref<512x32xf32, #tpu.memory_space<vmem>>, vector<512x32xf32>
    %cst_10 = arith.constant dense<0.000000e+00> : vector<1x32xf32>
    %12 = tpu.matmul %8, %11, %cst_10 {dimension_numbers = #tpu.dot_dimension_numbers<[1], [0], [0], [1], [0, 0, 1, 1], [], []>} : vector<1x512xf32>, vector<512x32xf32>, vector<1x32xf32> -> vector<1x32xf32>
    %c0_11 = arith.constant 0 : index
    %c0_12 = arith.constant 0 : index
    %13 = vector.load %arg6[%c0_11, %c0_12] : memref<512x32xf32, #tpu.memory_space<vmem>>, vector<512x32xf32>
    %cst_13 = arith.constant dense<0.000000e+00> : vector<1x32xf32>
    %14 = tpu.matmul %10, %13, %cst_13 {dimension_numbers = #tpu.dot_dimension_numbers<[1], [0], [0], [1], [0, 0, 1, 1], [], []>} : vector<1x512xf32>, vector<512x32xf32>, vector<1x32xf32> -> vector<1x32xf32>
    %cst_14 = arith.constant 3.906250e-03 : f32
    %15 = vector.broadcast %cst_14 : f32 to vector<1x32xf32>
    %16 = arith.mulf %12, %15 : vector<1x32xf32>
    %cst_15 = arith.constant 3.906250e-03 : f32
    %17 = vector.broadcast %cst_15 : f32 to vector<1x32xf32>
    %18 = arith.mulf %14, %17 : vector<1x32xf32>
    %19 = arith.mulf %16, %16 : vector<1x32xf32>
    %20 = arith.subf %18, %19 : vector<1x32xf32>
    %cst_16 = arith.constant 9.99999974E-6 : f32
    %21 = vector.broadcast %cst_16 : f32 to vector<1x32xf32>
    %22 = arith.addf %20, %21 : vector<1x32xf32>
    %23 = math.rsqrt %22 : vector<1x32xf32>
    %c0_17 = arith.constant 0 : index
    %c0_18 = arith.constant 0 : index
    %24 = vector.load %arg7[%c0_17, %c0_18] : memref<32x512xf32, #tpu.memory_space<vmem>>, vector<32x512xf32>
    %cst_19 = arith.constant dense<0.000000e+00> : vector<1x512xf32>
    %25 = tpu.matmul %16, %24, %cst_19 {dimension_numbers = #tpu.dot_dimension_numbers<[1], [0], [0], [1], [0, 0, 1, 1], [], []>} : vector<1x32xf32>, vector<32x512xf32>, vector<1x512xf32> -> vector<1x512xf32>
    %c0_20 = arith.constant 0 : index
    %c0_21 = arith.constant 0 : index
    %26 = vector.load %arg7[%c0_20, %c0_21] : memref<32x512xf32, #tpu.memory_space<vmem>>, vector<32x512xf32>
    %cst_22 = arith.constant dense<0.000000e+00> : vector<1x512xf32>
    %27 = tpu.matmul %23, %26, %cst_22 {dimension_numbers = #tpu.dot_dimension_numbers<[1], [0], [0], [1], [0, 0, 1, 1], [], []>} : vector<1x32xf32>, vector<32x512xf32>, vector<1x512xf32> -> vector<1x512xf32>
    %c0_23 = arith.constant 0 : index
    %c0_24 = arith.constant 0 : index
    %28 = vector.load %arg4[%c0_23, %c0_24] : memref<1x512xf32, #tpu.memory_space<vmem>>, vector<1x512xf32>
    %29 = arith.mulf %27, %28 : vector<1x512xf32>
    %c0_25 = arith.constant 0 : index
    %c0_26 = arith.constant 0 : index
    %30 = vector.load %arg5[%c0_25, %c0_26] : memref<1x512xf32, #tpu.memory_space<vmem>>, vector<1x512xf32>
    %31 = arith.mulf %25, %29 : vector<1x512xf32>
    %32 = arith.subf %30, %31 : vector<1x512xf32>
    %33 = vector.shape_cast %29 : vector<1x512xf32> to vector<1x1x512xf32>
    %34 = vector.broadcast %33 : vector<1x1x512xf32> to vector<1x16x512xf32>
    %35 = arith.mulf %7, %34 : vector<1x16x512xf32>
    %36 = vector.shape_cast %32 : vector<1x512xf32> to vector<1x1x512xf32>
    %37 = vector.broadcast %36 : vector<1x1x512xf32> to vector<1x16x512xf32>
    %38 = arith.addf %35, %37 : vector<1x16x512xf32>
    %cst_27 = arith.constant 0.000000e+00 : f32
    %39 = vector.broadcast %cst_27 : f32 to vector<1x16x512xf32>
    %40 = arith.maximumf %38, %39 : vector<1x16x512xf32>
    %c0_28 = arith.constant 0 : index
    %c0_29 = arith.constant 0 : index
    %c0_30 = arith.constant 0 : index
    %41 = vector.load %arg8[%c0_28, %c0_29, %c0_30] : memref<1x16x512xf32, #tpu.memory_space<vmem>>, vector<1x16x512xf32>
    tpu.vector_store %arg8[%c0_28, %c0_29, %c0_30], %40 {strides = array<i32>} : memref<1x16x512xf32, #tpu.memory_space<vmem>>, vector<1x16x512xf32>,
    return
  }
  func.func @transform_0(%arg0: i32) -> (i32, i32, i32) {
    %c0_i32 = arith.constant 0 : i32
    %c0_i32_0 = arith.constant 0 : i32
    %c0_i32_1 = arith.constant 0 : i32
    return %arg0, %c0_i32, %c0_i32_0 : i32, i32, i32
  }
  func.func @transform_1(%arg0: i32) -> (i32, i32) {
    %c0_i32 = arith.constant 0 : i32
    %c0_i32_0 = arith.constant 0 : i32
    %c0_i32_1 = arith.constant 0 : i32
    return %c0_i32, %c0_i32_0 : i32, i32
  }
  func.func @transform_2(%arg0: i32) -> (i32, i32) {
    %c0_i32 = arith.constant 0 : i32
    %c0_i32_0 = arith.constant 0 : i32
    %c0_i32_1 = arith.constant 0 : i32
    return %c0_i32, %c0_i32_0 : i32, i32
  }
  func.func @transform_3(%arg0: i32) -> (i32, i32) {
    %c0_i32 = arith.constant 0 : i32
    %c0_i32_0 = arith.constant 0 : i32
    %c0_i32_1 = arith.constant 0 : i32
    return %c0_i32, %c0_i32_0 : i32, i32
  }
  func.func @transform_4(%arg0: i32) -> (i32, i32) {
    %c0_i32 = arith.constant 0 : i32
    %c0_i32_0 = arith.constant 0 : i32
    %c0_i32_1 = arith.constant 0 : i32
    return %c0_i32, %c0_i32_0 : i32, i32
  }
  func.func @transform_5(%arg0: i32) -> (i32, i32) {
    %c0_i32 = arith.constant 0 : i32
    %c0_i32_0 = arith.constant 0 : i32
    %c0_i32_1 = arith.constant 0 : i32
    return %c0_i32, %c0_i32_0 : i32, i32
  }
  func.func @transform_6(%arg0: i32) -> (i32, i32) {
    %c0_i32 = arith.constant 0 : i32
    %c0_i32_0 = arith.constant 0 : i32
    %c0_i32_1 = arith.constant 0 : i32
    return %c0_i32, %c0_i32_0 : i32, i32
  }
  func.func @transform_7(%arg0: i32) -> (i32, i32, i32) {
    %c0_i32 = arith.constant 0 : i32
    %c0_i32_0 = arith.constant 0 : i32
    %c0_i32_1 = arith.constant 0 : i32
    return %arg0, %c0_i32, %c0_i32_0 : i32, i32, i32
  }
}

</mosaic_0001>

<bundles_post_ra>
// kernel: tile.18
= control target key start
LH: loop header
LB: loop body
LE: loop exit
PB: predicated region body
PF: predicated region fallthrough
CT: control target
= control target key end

     0   :  { %s28_s0 = inlined_call_operand.vmem [shape: f32[32], index: 0, kind: input, shape index: {}]   ;;  %s29_s1 = inlined_call_operand.vmem [shape: f32[16,32], index: 1, kind: output, shape index: {}]  }
   0x1   :  { %v4_v0 = vld [vmem:[%s28_s0] ss:$0 sm:$0xff] }
   0x2   :  { %5 = vst [vmem:[%s29_s1] sm:$0xff] %v4_v0  ;;  %8 = vst [vmem:[%s29_s1 + $0x8] sm:$0xff] %v4_v0 }

// kernel: tile.19
= control target key start
LH: loop header
LB: loop body
LE: loop exit
PB: predicated region body
PF: predicated region fallthrough
CT: control target
= control target key end

     0   :  { %s62_s8 = smov 96   ;;  %vm3_vm0 = vcmask 261120   ;;  %s64_s15 = smov 64   ;;  %vm9_vm1 = vcmask 1048320   ;;  %vm15_vm2 = vcmask 785920   ;;  %vm21_vm3 = vcmask 523520   ;;  %s99_s0 = inlined_call_operand.vmem [shape: f32[16,32], index: 0, kind: input, shape index: {}]   ;;  %s100_s1 = inlined_call_operand.vmem [shape: f32[1,512], index: 1, kind: output, shape index: {}]  }
   0x1   :  { %v53_v0 = vld [vmem:[%s99_s0 + $0x3] ss:$4 sm:$0xf]   ;;  %v54_v1 = vld [vmem:[%s99_s0 + $0x2] ss:$4 sm:$0xf]  }
   0x2   :  { %7 = vrot.lane.b32.xlu0 %v53_v0, %s62_s8  ;;  %v55_v2 = vld [vmem:[%s99_s0 + $0x1] ss:$4 sm:$0xf]   ;;  %v2_v3 = vld [vmem:[%s99_s0] ss:$4 sm:$0xf]  }
   0x3   :  { %s63_s0 = smov 32   ;;  %4 = vst.msk [vmem:[#allocation0] ss:$8 sm:$0xf] %vm3_vm0, %v2_v3  }
   0x4   :  { %19 = vrot.lane.b32.xlu1 %v55_v2, %s63_s0 }
   0x6   :  { %13 = vrot.lane.b32.xlu0 %v54_v1, %s64_s15 }
  0x74   :  { %v8_v4 = vpop.permute.xlu0 %7  }
  0x75   :  { %10 = vst.msk [vmem:[#allocation0] ss:$8 sm:$0xf] %vm9_vm1, %v8_v4  }
  0x76   :  { %v20_v5 = vpop.permute.xlu1 %19  }
  0x78   :  { %v14_v6 = vpop.permute.xlu0 %13  }
  0x79   :  { %16 = vst.msk [vmem:[#allocation0] ss:$8 sm:$0xf] %vm15_vm2, %v14_v6  }
  0x7a   :  { %22 = vst.msk [vmem:[#allocation0] ss:$8 sm:$0xf] %vm21_vm3, %v20_v5  }
  0x81   :  { %v27_v7 = vld [vmem:[#allocation0] sm:$0x1]  ;;  %v32_v8 = vld [vmem:[#allocation0 + $0x8] sm:$0x1]  ;;  %v38_v9 = vld [vmem:[#allocation0 + $0x10] sm:$0x1] }
  0x82   :  { %30 = vst [vmem:[%s100_s1] sm:$0x1] %v27_v7  ;;  %56 = vst [vmem:[%s100_s1 + $0x1] sm:$0x1] %v32_v8  ;;  %v45_v10 = vld [vmem:[#allocation0 + $0x18] sm:$0x1] }
  0x83   :  { %57 = vst [vmem:[%s100_s1 + $0x2] sm:$0x1] %v38_v9  ;;  %58 = vst [vmem:[%s100_s1 + $0x3] sm:$0x1] %v45_v10 }

// kernel: pixelcnn_block.1
= control target key start
LH: loop header
LB: loop body
LE: loop exit
PB: predicated region body
PF: predicated region fallthrough
CT: control target
= control target key end

     0   :  { %s2720_s24 = smov 0   ;;  %s3737_s0 = inlined_call_operand.vmem [shape: bf16[2,16,512], index: 0, kind: input, shape index: {}]   ;;  %s3738_s1 = inlined_call_operand.vmem [shape: bf16[512,512], index: 1, kind: input, shape index: {}]   ;;  %s3739_s2 = inlined_call_operand.vmem [shape: f32[1,512], index: 2, kind: input, shape index: {}]   ;;  %s3740_s3 = inlined_call_operand.vmem [shape: f32[1,512], index: 3, kind: input, shape index: {}]   ;;  %s3741_s4 = inlined_call_operand.vmem [shape: f32[1,512], index: 4, kind: input, shape index: {}]   ;;  %s3742_s5 = inlined_call_operand.vmem [shape: f32[512,32], index: 5, kind: input, shape index: {}]   ;;  %s3743_s6 = inlined_call_operand.vmem [shape: f32[32,512], index: 6, kind: input, shape index: {}]   ;;  %s3744_s7 = inlined_call_operand.vmem [shape: f32[2,16,512], index: 7, kind: output, shape index: {}]  }
   0x1 LB: > { %s2171_s25 = sadd.s32 4294967295, %s2676_s24   ;;  %p2175_p0 = scmp.ge.s32.totalorder %s2676_s24, 1  ;;  %s2676_s24 = sphi %s2720_s24, %s17_s24  }
   0x2   : > { %p237_p1 = scmp.lt.s32.totalorder %s2676_s24, 3 }
   0x4   : > { %p238_p2 = pnand %p2175_p0, %p237_p1 }
   0x6   : > { %241 = sbr.rel (%p238_p2) target bundleno = 828 (0x33c), region = 48 }
   0xb   : > { %v2470_v0 = vld [vmem:[%s3738_s1 + $0xe4] ss:$16 sps:$4 sm:$0xff]   ;;  %v2474_v2 = vld [vmem:[%s3738_s1 + $0xe0] ss:$16 sps:$4 sm:$0xff]   ;;  %p269_p3 = scmp.lt.s32.totalorder %s2171_s25, 1  ;;  %vm1695_vm0 = vcmask 261120  }
   0xc   : > { %v2472_v1 = vld [vmem:[%s3738_s1 + $0x2e4] ss:$16 sps:$4 sm:$0xff]   ;;  %1093 = vmatprep.subr.bf16.mxu0 %v2470_v0  ;;  %v2475_v3 = vld [vmem:[%s3738_s1 + $0x2e0] ss:$16 sps:$4 sm:$0xff]  }
   0xd   : > { %1136 = vmatprep.subr.bf16.mxu1 %v2472_v1  ;;  %v2476_v4 = vld [vmem:[%s3738_s1 + $0xc4] ss:$16 sps:$4 sm:$0xff]   ;;  %1094 = vmatpush1.bf16.msra.mxu0 %v2474_v2  ;;  %v2480_v6 = vld [vmem:[%s3738_s1 + $0xc0] ss:$16 sps:$4 sm:$0xff]   ;;  %s3835_s25 = smov (!%p269_p3, %s2171_s25), 1 }
   0xe   : > { %1137 = vmatpush1.bf16.msra.mxu1 %v2475_v3  ;;  %v2478_v5 = vld [vmem:[%s3738_s1 + $0x2c4] ss:$16 sps:$4 sm:$0xff]   ;;  %1095 = vmatprep.subr.bf16.mxu0 %v2476_v4  ;;  %v2481_v7 = vld [vmem:[%s3738_s1 + $0x2c0] ss:$16 sps:$4 sm:$0xff]   ;;  %s2318_s26 = sshll.u32 %s3835_s25, 5  ;;  %s2319_s10 = sshll.u32 %s3835_s25, 6 }
   0xf   : > { %1138 = vmatprep.subr.bf16.mxu1 %v2478_v5  ;;  %v2482_v8 = vld [vmem:[%s3738_s1 + $0xa4] ss:$16 sps:$4 sm:$0xff]   ;;  %v2486_v10 = vld [vmem:[%s3738_s1 + $0xa0] ss:$16 sps:$4 sm:$0xff]   ;;  %s2873_s12 = scalar_lea.vmem %s3737_s0, %s2318_s26  ;;  %v2574_v2 = vld [vmem:[%s3738_s1 + $0xec] ss:$16 sps:$4 sm:$0xff]   ;;  %s278_s13 = scalar_lea.vmem %s3744_s7, %s2319_s10 }
  0x10   : > { %v2484_v9 = vld [vmem:[%s3738_s1 + $0x2a4] ss:$16 sps:$4 sm:$0xff]   ;;  %v2487_v11 = vld [vmem:[%s3738_s1 + $0x2a0] ss:$16 sps:$4 sm:$0xff]   ;;  %v2571_v51 = vld [vmem:[%s2873_s12 + $0xc] ss:$16 sps:$4 sm:$0xff]  }
  0x11   : > { %1096 = vmatpush1.bf16.msra.mxu0 %v2480_v6  ;;  %v2488_v12 = vld [vmem:[%s3738_s1 + $0x84] ss:$16 sps:$4 sm:$0xff]   ;;  %v2492_v14 = vld [vmem:[%s3738_s1 + $0x80] ss:$16 sps:$4 sm:$0xff]   ;;  %1168 = vmatprep.mubr.bf16.mxu1 %v2571_v51  ;;  %v2577_v3 = vld [vmem:[%s3738_s1 + $0x2ec] ss:$16 sps:$4 sm:$0xff]  }
  0x12   : > { %1139 = vmatpush1.bf16.msra.mxu1 %v2481_v7  ;;  %1097 = vmatprep.subr.bf16.mxu0 %v2482_v8  ;;  %v2490_v13 = vld [vmem:[%s3738_s1 + $0x284] ss:$16 sps:$4 sm:$0xff]   ;;  %v2493_v15 = vld [vmem:[%s3738_s1 + $0x280] ss:$16 sps:$4 sm:$0xff]   ;;  %v2944_v5 = vld [vmem:[%s2873_s12 + $0x8] ss:$16 sps:$4 sm:$0xff]  }
  0x13   : > { %1140 = vmatprep.subr.bf16.mxu1 %v2484_v9  ;;  %v2494_v16 = vld [vmem:[%s3738_s1 + $0x64] ss:$16 sps:$4 sm:$0xff]   ;;  %v2498_v18 = vld [vmem:[%s3738_s1 + $0x60] ss:$16 sps:$4 sm:$0xff]   ;;  %v2572_v6 = vld [vmem:[%s3738_s1 + $0xe8] ss:$16 sps:$4 sm:$0xff]  }
  0x14   : > { %v2496_v17 = vld [vmem:[%s3738_s1 + $0x264] ss:$16 sps:$4 sm:$0xff]   ;;  %v2499_v19 = vld [vmem:[%s3738_s1 + $0x260] ss:$16 sps:$4 sm:$0xff]   ;;  %v2575_v7 = vld [vmem:[%s3738_s1 + $0x2e8] ss:$16 sps:$4 sm:$0xff]  }
  0x15   : > { %1098 = vmatpush1.bf16.msra.mxu0 %v2486_v10  ;;  %v2500_v20 = vld [vmem:[%s3738_s1 + $0x44] ss:$16 sps:$4 sm:$0xff]   ;;  %v2504_v22 = vld [vmem:[%s3738_s1 + $0x40] ss:$16 sps:$4 sm:$0xff]   ;;  %v2580_v8 = vld [vmem:[%s3738_s1 + $0xcc] ss:$16 sps:$4 sm:$0xff]  }
  0x16   : > { %1141 = vmatpush1.bf16.msra.mxu1 %v2487_v11  ;;  %1099 = vmatprep.subr.bf16.mxu0 %v2488_v12  ;;  %v2502_v21 = vld [vmem:[%s3738_s1 + $0x244] ss:$16 sps:$4 sm:$0xff]   ;;  %v2505_v23 = vld [vmem:[%s3738_s1 + $0x240] ss:$16 sps:$4 sm:$0xff]   ;;  %v2583_v9 = vld [vmem:[%s3738_s1 + $0x2cc] ss:$16 sps:$4 sm:$0xff]  }
  0x17   : > { %1142 = vmatprep.subr.bf16.mxu1 %v2490_v13  ;;  %v2506_v24 = vld [vmem:[%s3738_s1 + $0x24] ss:$16 sps:$4 sm:$0xff]   ;;  %v2510_v26 = vld [vmem:[%s3738_s1 + $0x20] ss:$16 sps:$4 sm:$0xff]   ;;  %v2578_v10 = vld [vmem:[%s3738_s1 + $0xc8] ss:$16 sps:$4 sm:$0xff]  }
  0x18   : > { %v2508_v25 = vld [vmem:[%s3738_s1 + $0x224] ss:$16 sps:$4 sm:$0xff]   ;;  %v2511_v27 = vld [vmem:[%s3738_s1 + $0x220] ss:$16 sps:$4 sm:$0xff]   ;;  %v2581_v11 = vld [vmem:[%s3738_s1 + $0x2c8] ss:$16 sps:$4 sm:$0xff]  }
  0x19   : > { %1100 = vmatpush1.bf16.msra.mxu0 %v2492_v14  ;;  %v2512_v28 = vld [vmem:[%s3738_s1 + $0x4] ss:$16 sps:$4 sm:$0xff]   ;;  %v2516_v30 = vld [vmem:[%s3738_s1] ss:$16 sps:$4 sm:$0xff]   ;;  %v2586_v12 = vld [vmem:[%s3738_s1 + $0xac] ss:$16 sps:$4 sm:$0xff]  }
  0x1a   : > { %1143 = vmatpush1.bf16.msra.mxu1 %v2493_v15  ;;  %1101 = vmatprep.subr.bf16.mxu0 %v2494_v16  ;;  %v2514_v29 = vld [vmem:[%s3738_s1 + $0x204] ss:$16 sps:$4 sm:$0xff]   ;;  %v2517_v31 = vld [vmem:[%s3738_s1 + $0x200] ss:$16 sps:$4 sm:$0xff]   ;;  %v2589_v13 = vld [vmem:[%s3738_s1 + $0x2ac] ss:$16 sps:$4 sm:$0xff]  }
  0x1b   : > { %1144 = vmatprep.subr.bf16.mxu1 %v2496_v17  ;;  %v2518_v32 = vld [vmem:[%s3738_s1 + $0x1e4] ss:$16 sps:$4 sm:$0xff]   ;;  %v2522_v34 = vld [vmem:[%s3738_s1 + $0x1e0] ss:$16 sps:$4 sm:$0xff]   ;;  %v2584_v14 = vld [vmem:[%s3738_s1 + $0xa8] ss:$16 sps:$4 sm:$0xff]  }
  0x1c   : > { %v2520_v33 = vld [vmem:[%s3738_s1 + $0x3e4] ss:$16 sps:$4 sm:$0xff]   ;;  %v2523_v35 = vld [vmem:[%s3738_s1 + $0x3e0] ss:$16 sps:$4 sm:$0xff]   ;;  %v2587_v15 = vld [vmem:[%s3738_s1 + $0x2a8] ss:$16 sps:$4 sm:$0xff]  }
  0x1d   : > { %1102 = vmatpush1.bf16.msra.mxu0 %v2498_v18  ;;  %v2524_v36 = vld [vmem:[%s3738_s1 + $0x1c4] ss:$16 sps:$4 sm:$0xff]   ;;  %v2528_v38 = vld [vmem:[%s3738_s1 + $0x1c0] ss:$16 sps:$4 sm:$0xff]   ;;  %v2592_v16 = vld [vmem:[%s3738_s1 + $0x8c] ss:$16 sps:$4 sm:$0xff]  }
  0x1e   : > { %1145 = vmatpush1.bf16.msra.mxu1 %v2499_v19  ;;  %1103 = vmatprep.subr.bf16.mxu0 %v2500_v20  ;;  %v2526_v37 = vld [vmem:[%s3738_s1 + $0x3c4] ss:$16 sps:$4 sm:$0xff]   ;;  %v2529_v39 = vld [vmem:[%s3738_s1 + $0x3c0] ss:$16 sps:$4 sm:$0xff]   ;;  %v2595_v17 = vld [vmem:[%s3738_s1 + $0x28c] ss:$16 sps:$4 sm:$0xff]  }
  0x1f   : > { %1146 = vmatprep.subr.bf16.mxu1 %v2502_v21  ;;  %v2530_v40 = vld [vmem:[%s3738_s1 + $0x1a4] ss:$16 sps:$4 sm:$0xff]   ;;  %v2534_v42 = vld [vmem:[%s3738_s1 + $0x1a0] ss:$16 sps:$4 sm:$0xff]   ;;  %v2590_v18 = vld [vmem:[%s3738_s1 + $0x88] ss:$16 sps:$4 sm:$0xff]  }
  0x20   : > { %v2532_v41 = vld [vmem:[%s3738_s1 + $0x3a4] ss:$16 sps:$4 sm:$0xff]   ;;  %v2535_v43 = vld [vmem:[%s3738_s1 + $0x3a0] ss:$16 sps:$4 sm:$0xff]   ;;  %v2593_v19 = vld [vmem:[%s3738_s1 + $0x288] ss:$16 sps:$4 sm:$0xff]  }
  0x21   : > { %1104 = vmatpush1.bf16.msra.mxu0 %v2504_v22  ;;  %v2536_v44 = vld [vmem:[%s3738_s1 + $0x184] ss:$16 sps:$4 sm:$0xff]   ;;  %v2540_v46 = vld [vmem:[%s3738_s1 + $0x180] ss:$16 sps:$4 sm:$0xff]   ;;  %v2598_v20 = vld [vmem:[%s3738_s1 + $0x6c] ss:$16 sps:$4 sm:$0xff]  }
  0x22   : > { %1147 = vmatpush1.bf16.msra.mxu1 %v2505_v23  ;;  %1105 = vmatprep.subr.bf16.mxu0 %v2506_v24  ;;  %v2538_v45 = vld [vmem:[%s3738_s1 + $0x384] ss:$16 sps:$4 sm:$0xff]   ;;  %v2541_v47 = vld [vmem:[%s3738_s1 + $0x380] ss:$16 sps:$4 sm:$0xff]   ;;  %v2601_v21 = vld [vmem:[%s3738_s1 + $0x26c] ss:$16 sps:$4 sm:$0xff]  }
  0x23   : > { %1148 = vmatprep.subr.bf16.mxu1 %v2508_v25  ;;  %v2542_v48 = vld [vmem:[%s3738_s1 + $0x164] ss:$16 sps:$4 sm:$0xff]   ;;  %v2546_v52 = vld [vmem:[%s3738_s1 + $0x160] ss:$16 sps:$4 sm:$0xff]   ;;  %v2596_v22 = vld [vmem:[%s3738_s1 + $0x68] ss:$16 sps:$4 sm:$0xff]  }
  0x24   : > { %v2568_v49 = vld [vmem:[%s2873_s12 + $0x4] ss:$16 sps:$4 sm:$0xff]   ;;  %v2547_v53 = vld [vmem:[%s3738_s1 + $0x360] ss:$16 sps:$4 sm:$0xff]   ;;  %v2599_v23 = vld [vmem:[%s3738_s1 + $0x268] ss:$16 sps:$4 sm:$0xff]  }
  0x25   : > { %1106 = vmatpush1.bf16.msra.mxu0 %v2510_v26  ;;  %v2544_v50 = vld [vmem:[%s3738_s1 + $0x364] ss:$16 sps:$4 sm:$0xff]   ;;  %1125 = vmatprep.mubr.bf16.mxu0 %v2568_v49  ;;  %v2552_v56 = vld [vmem:[%s3738_s1 + $0x140] ss:$16 sps:$4 sm:$0xff]   ;;  %v2604_v24 = vld [vmem:[%s3738_s1 + $0x4c] ss:$16 sps:$4 sm:$0xff]  }
  0x26   : > { %1149 = vmatpush1.bf16.msra.mxu1 %v2511_v27  ;;  %1107 = vmatprep.subr.bf16.mxu0 %v2512_v28  ;;  %v2548_v54 = vld [vmem:[%s3738_s1 + $0x144] ss:$16 sps:$4 sm:$0xff]   ;;  %v2553_v57 = vld [vmem:[%s3738_s1 + $0x340] ss:$16 sps:$4 sm:$0xff]   ;;  %v2607_v25 = vld [vmem:[%s3738_s1 + $0x24c] ss:$16 sps:$4 sm:$0xff]  }
  0x27   : > { %1150 = vmatprep.subr.bf16.mxu1 %v2514_v29  ;;  %v2550_v55 = vld [vmem:[%s3738_s1 + $0x344] ss:$16 sps:$4 sm:$0xff]   ;;  %v2558_v60 = vld [vmem:[%s3738_s1 + $0x120] ss:$16 sps:$4 sm:$0xff]   ;;  %v2602_v26 = vld [vmem:[%s3738_s1 + $0x48] ss:$16 sps:$4 sm:$0xff]  }
  0x28   : > { %v2554_v58 = vld [vmem:[%s3738_s1 + $0x124] ss:$16 sps:$4 sm:$0xff]   ;;  %v2559_v61 = vld [vmem:[%s3738_s1 + $0x320] ss:$16 sps:$4 sm:$0xff]   ;;  %v2605_v27 = vld [vmem:[%s3738_s1 + $0x248] ss:$16 sps:$4 sm:$0xff]  }
  0x29   : > { %1108 = vmatpush1.bf16.msra.mxu0 %v2516_v30  ;;  %v2556_v59 = vld [vmem:[%s3738_s1 + $0x324] ss:$16 sps:$4 sm:$0xff]   ;;  %v2564_v0 = vld [vmem:[%s3738_s1 + $0x100] ss:$16 sps:$4 sm:$0xff]   ;;  %v2610_v28 = vld [vmem:[%s3738_s1 + $0x2c] ss:$16 sps:$4 sm:$0xff]  }
  0x2a   : > { %1151 = vmatpush1.bf16.msra.mxu1 %v2517_v31  ;;  %1109 = vmatprep.subr.bf16.mxu0 %v2518_v32  ;;  %v2560_v62 = vld [vmem:[%s3738_s1 + $0x104] ss:$16 sps:$4 sm:$0xff]   ;;  %v2565_v1 = vld [vmem:[%s3738_s1 + $0x300] ss:$16 sps:$4 sm:$0xff]   ;;  %v2613_v29 = vld [vmem:[%s3738_s1 + $0x22c] ss:$16 sps:$4 sm:$0xff]  }
  0x2b   : > { %1152 = vmatprep.subr.bf16.mxu1 %v2520_v33  ;;  %v2562_v63 = vld [vmem:[%s3738_s1 + $0x304] ss:$16 sps:$4 sm:$0xff]   ;;  %v2941_v4 = vld [vmem:[%s2873_s12] ss:$16 sps:$4 sm:$0xff]   ;;  %v2608_v30 = vld [vmem:[%s3738_s1 + $0x28] ss:$16 sps:$4 sm:$0xff]  }
  0x2c   : > { %v2611_v31 = vld [vmem:[%s3738_s1 + $0x228] ss:$16 sps:$4 sm:$0xff]   ;;  %v2616_v32 = vld [vmem:[%s3738_s1 + $0xc] ss:$16 sps:$4 sm:$0xff]  }
  0x2d   : > { %1110 = vmatpush2.bf16.msra.mxu0 %v2522_v34  ;;  %v2619_v33 = vld [vmem:[%s3738_s1 + $0x20c] ss:$16 sps:$4 sm:$0xff]   ;;  %v2614_v34 = vld [vmem:[%s3738_s1 + $0x8] ss:$16 sps:$4 sm:$0xff]  }
  0x2e   : > { %1153 = vmatpush2.bf16.msra.mxu1 %v2523_v35  ;;  %1111 = vmatprep.subr.bf16.mxu0 %v2524_v36  ;;  %v2617_v35 = vld [vmem:[%s3738_s1 + $0x208] ss:$16 sps:$4 sm:$0xff]   ;;  %v2622_v36 = vld [vmem:[%s3738_s1 + $0x1ec] ss:$16 sps:$4 sm:$0xff]  }
  0x2f   : > { %1154 = vmatprep.subr.bf16.mxu1 %v2526_v37  ;;  %v2625_v37 = vld [vmem:[%s3738_s1 + $0x3ec] ss:$16 sps:$4 sm:$0xff]  }
  0x31   : > { %1112 = vmatpush2.bf16.msra.mxu0 %v2528_v38  ;;  %v2620_v38 = vld [vmem:[%s3738_s1 + $0x1e8] ss:$16 sps:$4 sm:$0xff]  }
  0x32   : > { %1155 = vmatpush2.bf16.msra.mxu1 %v2529_v39  ;;  %1113 = vmatprep.subr.bf16.mxu0 %v2530_v40  ;;  %v2623_v39 = vld [vmem:[%s3738_s1 + $0x3e8] ss:$16 sps:$4 sm:$0xff]   ;;  %v2628_v40 = vld [vmem:[%s3738_s1 + $0x1cc] ss:$16 sps:$4 sm:$0xff]  }
  0x33   : > { %1156 = vmatprep.subr.bf16.mxu1 %v2532_v41  ;;  %v2631_v41 = vld [vmem:[%s3738_s1 + $0x3cc] ss:$16 sps:$4 sm:$0xff]  }
  0x35   : > { %1114 = vmatpush2.bf16.msra.mxu0 %v2534_v42  ;;  %v2626_v42 = vld [vmem:[%s3738_s1 + $0x1c8] ss:$16 sps:$4 sm:$0xff]  }
  0x36   : > { %1157 = vmatpush2.bf16.msra.mxu1 %v2535_v43  ;;  %1115 = vmatprep.subr.bf16.mxu0 %v2536_v44  ;;  %v2629_v43 = vld [vmem:[%s3738_s1 + $0x3c8] ss:$16 sps:$4 sm:$0xff]   ;;  %v2634_v44 = vld [vmem:[%s3738_s1 + $0x1ac] ss:$16 sps:$4 sm:$0xff]  }
  0x37   : > { %1158 = vmatprep.subr.bf16.mxu1 %v2538_v45  ;;  %v2637_v45 = vld [vmem:[%s3738_s1 + $0x3ac] ss:$16 sps:$4 sm:$0xff]  }
  0x39   : > { %1116 = vmatpush2.bf16.msra.mxu0 %v2540_v46  ;;  %v2632_v46 = vld [vmem:[%s3738_s1 + $0x1a8] ss:$16 sps:$4 sm:$0xff]  }
  0x3a   : > { %1159 = vmatpush2.bf16.msra.mxu1 %v2541_v47  ;;  %1117 = vmatprep.subr.bf16.mxu0 %v2542_v48  ;;  %v2635_v47 = vld [vmem:[%s3738_s1 + $0x3a8] ss:$16 sps:$4 sm:$0xff]   ;;  %v2640_v48 = vld [vmem:[%s3738_s1 + $0x18c] ss:$16 sps:$4 sm:$0xff]  }
  0x3b   : > { %1160 = vmatprep.subr.bf16.mxu1 %v2544_v50  ;;  %v2638_v50 = vld [vmem:[%s3738_s1 + $0x188] ss:$16 sps:$4 sm:$0xff]  }
  0x3d   : > { %1118 = vmatpush2.bf16.msra.mxu0 %v2546_v52  ;;  %v2646_v52 = vld [vmem:[%s3738_s1 + $0x16c] ss:$16 sps:$4 sm:$0xff]  }
  0x3e   : > { %1161 = vmatpush2.bf16.msra.mxu1 %v2547_v53  ;;  %1119 = vmatprep.subr.bf16.mxu0 %v2548_v54  ;;  %v2649_v53 = vld [vmem:[%s3738_s1 + $0x36c] ss:$16 sps:$4 sm:$0xff]   ;;  %v2644_v54 = vld [vmem:[%s3738_s1 + $0x168] ss:$16 sps:$4 sm:$0xff]  }
  0x3f   : > { %1162 = vmatprep.subr.bf16.mxu1 %v2550_v55  ;;  %v2647_v55 = vld [vmem:[%s3738_s1 + $0x368] ss:$16 sps:$4 sm:$0xff]  }
  0x41   : > { %1120 = vmatpush2.bf16.msra.mxu0 %v2552_v56  ;;  %v2652_v56 = vld [vmem:[%s3738_s1 + $0x14c] ss:$16 sps:$4 sm:$0xff]  }
  0x42   : > { %1163 = vmatpush2.bf16.msra.mxu1 %v2553_v57  ;;  %1121 = vmatprep.subr.bf16.mxu0 %v2554_v58  ;;  %v2655_v57 = vld [vmem:[%s3738_s1 + $0x34c] ss:$16 sps:$4 sm:$0xff]   ;;  %v2650_v58 = vld [vmem:[%s3738_s1 + $0x148] ss:$16 sps:$4 sm:$0xff]  }
  0x43   : > { %1164 = vmatprep.subr.bf16.mxu1 %v2556_v59  ;;  %v2653_v59 = vld [vmem:[%s3738_s1 + $0x348] ss:$16 sps:$4 sm:$0xff]  }
  0x45   : > { %1122 = vmatpush2.bf16.msra.mxu0 %v2558_v60  ;;  %v2658_v60 = vld [vmem:[%s3738_s1 + $0x12c] ss:$16 sps:$4 sm:$0xff]  }
  0x46   : > { %1165 = vmatpush2.bf16.msra.mxu1 %v2559_v61  ;;  %1123 = vmatprep.subr.bf16.mxu0 %v2560_v62  ;;  %v2661_v61 = vld [vmem:[%s3738_s1 + $0x32c] ss:$16 sps:$4 sm:$0xff]   ;;  %v2656_v62 = vld [vmem:[%s3738_s1 + $0x128] ss:$16 sps:$4 sm:$0xff]  }
  0x47   : > { %1166 = vmatprep.subr.bf16.mxu1 %v2562_v63  ;;  %v2659_v63 = vld [vmem:[%s3738_s1 + $0x328] ss:$16 sps:$4 sm:$0xff]  }
  0x49   : > { %1124 = vmatpush2.bf16.msra.mxu0 %v2564_v0  ;;  %v2664_v0 = vld [vmem:[%s3738_s1 + $0x10c] ss:$16 sps:$4 sm:$0xff]  }
  0x4a   : > { %1167 = vmatpush2.bf16.msra.mxu1 %v2565_v1  ;;  %1179 = vmatprep.subr.bf16.mxu0 %v2574_v2  ;;  %v2667_v1 = vld [vmem:[%s3738_s1 + $0x30c] ss:$16 sps:$4 sm:$0xff]   ;;  %v2662_v2 = vld [vmem:[%s3738_s1 + $0x108] ss:$16 sps:$4 sm:$0xff]  }
  0x4b   : > { %1222 = vmatprep.subr.bf16.mxu1 %v2577_v3  ;;  %v2665_v3 = vld [vmem:[%s3738_s1 + $0x308] ss:$16 sps:$4 sm:$0xff]  }
  0x4c   : > { %1126 = vmatmul.mubr.bf16.vlgmr.msra.gmra.mxu0 %v2941_v4 }
  0x4d   : > { %1169 = vmatmul.mubr.bf16.vlgmr.msra.gmra.mxu1 %v2944_v5  ;;  %1180 = vmatpush1.bf16.msra.mxu0 %v2572_v6  ;;  %v3137_v6 = vld [vmem:[%s3742_s5 + $0xf8] sm:$0xff] }
  0x4e   : > { %1223 = vmatpush1.bf16.msra.mxu1 %v2575_v7  ;;  %1181 = vmatprep.subr.bf16.mxu0 %v2580_v8  ;;  %v3143_v7 = vld [vmem:[%s3742_s5 + $0x78] sm:$0xff]  ;;  %v3148_v8 = vld [vmem:[%s3742_s5 + $0xf0] sm:$0xff] }
  0x4f   : > { %1224 = vmatprep.subr.bf16.mxu1 %v2583_v9  ;;  %1211 = vmatprep.mubr.bf16.mxu0 %v2568_v49  ;;  %v2643_v49 = vld [vmem:[%s3738_s1 + $0x38c] ss:$16 sps:$4 sm:$0xff]   ;;  %v3155_v9 = vld [vmem:[%s3742_s5 + $0x70] sm:$0xff] }
  0x50   : > { %1254 = vmatprep.mubr.bf16.mxu1 %v2571_v51  ;;  %v2641_v51 = vld [vmem:[%s3738_s1 + $0x388] ss:$16 sps:$4 sm:$0xff]  }
  0x51   : > { %1182 = vmatpush1.bf16.msra.mxu0 %v2578_v10  ;;  %v3161_v10 = vld [vmem:[%s3742_s5 + $0xe8] sm:$0xff] }
  0x52   : > { %1225 = vmatpush1.bf16.msra.mxu1 %v2581_v11  ;;  %1183 = vmatprep.subr.bf16.mxu0 %v2586_v12  ;;  %v3179_v11 = vld [vmem:[%s3742_s5 + $0x60] sm:$0xff]  ;;  %v3185_v12 = vld [vmem:[%s3742_s5 + $0xd8] sm:$0xff] }
  0x53   : > { %1226 = vmatprep.subr.bf16.mxu1 %v2589_v13  ;;  %v3191_v13 = vld [vmem:[%s3742_s5 + $0x58] sm:$0xff] }
  0x55   : > { %1184 = vmatpush1.bf16.msra.mxu0 %v2584_v14  ;;  %v3197_v14 = vld [vmem:[%s3742_s5 + $0xd0] sm:$0xff] }
  0x56   : > { %1227 = vmatpush1.bf16.msra.mxu1 %v2587_v15  ;;  %1185 = vmatprep.subr.bf16.mxu0 %v2592_v16  ;;  %v3203_v15 = vld [vmem:[%s3742_s5 + $0x50] sm:$0xff]  ;;  %v3209_v16 = vld [vmem:[%s3742_s5 + $0xc8] sm:$0xff] }
  0x57   : > { %1228 = vmatprep.subr.bf16.mxu1 %v2595_v17  ;;  %v3215_v17 = vld [vmem:[%s3742_s5 + $0x48] sm:$0xff] }
  0x59   : > { %1186 = vmatpush1.bf16.msra.mxu0 %v2590_v18  ;;  %v3221_v18 = vld [vmem:[%s3742_s5 + $0xc0] sm:$0xff] }
  0x5a   : > { %1229 = vmatpush1.bf16.msra.mxu1 %v2593_v19  ;;  %1187 = vmatprep.subr.bf16.mxu0 %v2598_v20  ;;  %v3227_v19 = vld [vmem:[%s3742_s5 + $0x40] sm:$0xff]  ;;  %v3233_v20 = vld [vmem:[%s3742_s5 + $0xb8] sm:$0xff] }
  0x5b   : > { %1230 = vmatprep.subr.bf16.mxu1 %v2601_v21  ;;  %v3239_v21 = vld [vmem:[%s3742_s5 + $0x38] sm:$0xff] }
  0x5d   : > { %1188 = vmatpush1.bf16.msra.mxu0 %v2596_v22  ;;  %v3245_v22 = vld [vmem:[%s3742_s5 + $0xb0] sm:$0xff] }
  0x5e   : > { %1231 = vmatpush1.bf16.msra.mxu1 %v2599_v23  ;;  %1189 = vmatprep.subr.bf16.mxu0 %v2604_v24  ;;  %v3251_v23 = vld [vmem:[%s3742_s5 + $0x30] sm:$0xff]  ;;  %v3257_v24 = vld [vmem:[%s3742_s5 + $0xa8] sm:$0xff] }
  0x5f   : > { %1232 = vmatprep.subr.bf16.mxu1 %v2607_v25  ;;  %v3263_v25 = vld [vmem:[%s3742_s5 + $0x28] sm:$0xff] }
  0x61   : > { %1190 = vmatpush1.bf16.msra.mxu0 %v2602_v26  ;;  %v3269_v26 = vld [vmem:[%s3742_s5 + $0xa0] sm:$0xff] }
  0x62   : > { %1233 = vmatpush1.bf16.msra.mxu1 %v2605_v27  ;;  %1191 = vmatprep.subr.bf16.mxu0 %v2610_v28  ;;  %v3275_v27 = vld [vmem:[%s3742_s5 + $0x20] sm:$0xff]  ;;  %v3281_v28 = vld [vmem:[%s3742_s5 + $0x98] sm:$0xff] }
  0x63   : > { %1234 = vmatprep.subr.bf16.mxu1 %v2613_v29  ;;  %v3287_v29 = vld [vmem:[%s3742_s5 + $0x18] sm:$0xff] }
  0x65   : > { %1192 = vmatpush1.bf16.msra.mxu0 %v2608_v30  ;;  %v3293_v30 = vld [vmem:[%s3742_s5 + $0x90] sm:$0xff] }
  0x66   : > { %1235 = vmatpush1.bf16.msra.mxu1 %v2611_v31  ;;  %1193 = vmatprep.subr.bf16.mxu0 %v2616_v32  ;;  %v3299_v31 = vld [vmem:[%s3742_s5 + $0x10] sm:$0xff]  ;;  %v3305_v32 = vld [vmem:[%s3742_s5 + $0x88] sm:$0xff] }
  0x67   : > { %1236 = vmatprep.subr.bf16.mxu1 %v2619_v33  ;;  %v3311_v33 = vld [vmem:[%s3742_s5 + $0x8] sm:$0xff] }
  0x69   : > { %1194 = vmatpush1.bf16.msra.mxu0 %v2614_v34  ;;  %v3317_v34 = vld [vmem:[%s3742_s5 + $0x80] sm:$0xff] }
  0x6a   : > { %1237 = vmatpush1.bf16.msra.mxu1 %v2617_v35  ;;  %1195 = vmatprep.subr.bf16.mxu0 %v2622_v36  ;;  %v3323_v35 = vld [vmem:[%s3742_s5] sm:$0xff]  ;;  %v3332_v36 = vld [vmem:[%s3742_s5 + $0x1f8] sm:$0xff] }
  0x6b   : > { %1238 = vmatprep.subr.bf16.mxu1 %v2625_v37  ;;  %v3338_v37 = vld [vmem:[%s3742_s5 + $0x178] sm:$0xff] }
  0x6d   : > { %1196 = vmatpush2.bf16.msra.mxu0 %v2620_v38  ;;  %v3343_v38 = vld [vmem:[%s3742_s5 + $0x1f0] sm:$0xff] }
  0x6e   : > { %1239 = vmatpush2.bf16.msra.mxu1 %v2623_v39  ;;  %1197 = vmatprep.subr.bf16.mxu0 %v2628_v40  ;;  %v3348_v39 = vld [vmem:[%s3742_s5 + $0x170] sm:$0xff]  ;;  %v3354_v40 = vld [vmem:[%s3742_s5 + $0x1e8] sm:$0xff] }
  0x6f   : > { %1240 = vmatprep.subr.bf16.mxu1 %v2631_v41  ;;  %v3360_v41 = vld [vmem:[%s3742_s5 + $0x168] sm:$0xff] }
  0x71   : > { %1198 = vmatpush2.bf16.msra.mxu0 %v2626_v42  ;;  %v3366_v42 = vld [vmem:[%s3742_s5 + $0x1e0] sm:$0xff] }
  0x72   : > { %1241 = vmatpush2.bf16.msra.mxu1 %v2629_v43  ;;  %1199 = vmatprep.subr.bf16.mxu0 %v2634_v44  ;;  %3776 = vst [vmem:[#allocation2_spill] sm:$0xff] %v3366_v42  ;;  %v3374_v43 = vld [vmem:[%s3742_s5 + $0x160] sm:$0xff]  ;;  %v3380_v44 = vld [vmem:[%s3742_s5 + $0x1d8] sm:$0xff] }
  0x73   : > { %1242 = vmatprep.subr.bf16.mxu1 %v2637_v45  ;;  %3777 = vst [vmem:[#allocation3_spill] sm:$0xff] %v3374_v43  ;;  %3778 = vst [vmem:[#allocation4_spill] sm:$0xff] %v3380_v44  ;;  %v3386_v45 = vld [vmem:[%s3742_s5 + $0x158] sm:$0xff] }
  0x74   : > { %3779 = vst [vmem:[#allocation5_spill] sm:$0xff] %v3386_v45 }
  0x75   : > { %1200 = vmatpush2.bf16.msra.mxu0 %v2632_v46  ;;  %v3392_v46 = vld [vmem:[%s3742_s5 + $0x1d0] sm:$0xff] }
  0x76   : > { %1243 = vmatpush2.bf16.msra.mxu1 %v2635_v47  ;;  %1201 = vmatprep.subr.bf16.mxu0 %v2640_v48  ;;  %3780 = vst [vmem:[#allocation6_spill] sm:$0xff] %v3392_v46  ;;  %v3398_v47 = vld [vmem:[%s3742_s5 + $0x150] sm:$0xff]  ;;  %v3404_v48 = vld [vmem:[%s3742_s5 + $0x1c8] sm:$0xff] }
  0x77   : > { %1244 = vmatprep.subr.bf16.mxu1 %v2643_v49  ;;  %3781 = vst [vmem:[#allocation7_spill] sm:$0xff] %v3398_v47  ;;  %3782 = vst [vmem:[#allocation8_spill] sm:$0xff] %v3404_v48  ;;  %v3410_v49 = vld [vmem:[%s3742_s5 + $0x148] sm:$0xff] }
  0x78   : > { %3783 = vst [vmem:[#allocation9_spill] sm:$0xff] %v3410_v49 }
  0x79   : > { %1202 = vmatpush2.bf16.msra.mxu0 %v2638_v50  ;;  %v3416_v50 = vld [vmem:[%s3742_s5 + $0x1c0] sm:$0xff] }
  0x7a   : > { %1245 = vmatpush2.bf16.msra.mxu1 %v2641_v51  ;;  %1203 = vmatprep.subr.bf16.mxu0 %v2646_v52  ;;  %3784 = vst [vmem:[#allocation10_spill] sm:$0xff] %v3416_v50  ;;  %v3422_v51 = vld [vmem:[%s3742_s5 + $0x140] sm:$0xff]  ;;  %v3428_v52 = vld [vmem:[%s3742_s5 + $0x1b8] sm:$0xff] }
  0x7b   : > { %1246 = vmatprep.subr.bf16.mxu1 %v2649_v53  ;;  %3785 = vst [vmem:[#allocation11_spill] sm:$0xff] %v3422_v51  ;;  %3786 = vst [vmem:[#allocation12_spill] sm:$0xff] %v3428_v52  ;;  %v3434_v53 = vld [vmem:[%s3742_s5 + $0x138] sm:$0xff] }
  0x7c   : > { %3787 = vst [vmem:[#allocation13_spill] sm:$0xff] %v3434_v53 }
  0x7d   : > { %1204 = vmatpush2.bf16.msra.mxu0 %v2644_v54  ;;  %v3440_v54 = vld [vmem:[%s3742_s5 + $0x1b0] sm:$0xff] }
  0x7e   : > { %1247 = vmatpush2.bf16.msra.mxu1 %v2647_v55  ;;  %1205 = vmatprep.subr.bf16.mxu0 %v2652_v56  ;;  %3788 = vst [vmem:[#allocation14_spill] sm:$0xff] %v3440_v54  ;;  %v3446_v55 = vld [vmem:[%s3742_s5 + $0x130] sm:$0xff]  ;;  %v3452_v56 = vld [vmem:[%s3742_s5 + $0x1a8] sm:$0xff] }
  0x7f   : > { %1248 = vmatprep.subr.bf16.mxu1 %v2655_v57  ;;  %3789 = vst [vmem:[#allocation15_spill] sm:$0xff] %v3446_v55  ;;  %3790 = vst [vmem:[#allocation16_spill] sm:$0xff] %v3452_v56  ;;  %v3458_v57 = vld [vmem:[%s3742_s5 + $0x128] sm:$0xff] }
  0x80   : > { %3791 = vst [vmem:[#allocation17_spill] sm:$0xff] %v3458_v57 }
  0x81   : > { %1206 = vmatpush2.bf16.msra.mxu0 %v2650_v58  ;;  %v3464_v58 = vld [vmem:[%s3742_s5 + $0x1a0] sm:$0xff] }
  0x82   : > { %1249 = vmatpush2.bf16.msra.mxu1 %v2653_v59  ;;  %1207 = vmatprep.subr.bf16.mxu0 %v2658_v60  ;;  %3792 = vst [vmem:[#allocation18_spill] sm:$0xff] %v3464_v58  ;;  %v3470_v59 = vld [vmem:[%s3742_s5 + $0x120] sm:$0xff]  ;;  %v3476_v60 = vld [vmem:[%s3742_s5 + $0x198] sm:$0xff] }
  0x83   : > { %1250 = vmatprep.subr.bf16.mxu1 %v2661_v61  ;;  %3793 = vst [vmem:[#allocation19_spill] sm:$0xff] %v3470_v59  ;;  %3794 = vst [vmem:[#allocation20_spill] sm:$0xff] %v3476_v60  ;;  %v3481_v61 = vld [vmem:[%s3742_s5 + $0x118] sm:$0xff] }
  0x84   : > { %3795 = vst [vmem:[#allocation21_spill] sm:$0xff] %v3481_v61 }
  0x85   : > { %1208 = vmatpush2.bf16.msra.mxu0 %v2656_v62  ;;  %v3486_v62 = vld [vmem:[%s3742_s5 + $0x190] sm:$0xff] }
  0x86   : > { %1251 = vmatpush2.bf16.msra.mxu1 %v2659_v63  ;;  %1209 = vmatprep.subr.bf16.mxu0 %v2664_v0  ;;  %3796 = vst [vmem:[#allocation22_spill] sm:$0xff] %v3486_v62  ;;  %v3492_v63 = vld [vmem:[%s3742_s5 + $0x110] sm:$0xff]  ;;  %v3498_v0 = vld [vmem:[%s3742_s5 + $0x188] sm:$0xff] }
  0x87   : > { %1252 = vmatprep.subr.bf16.mxu1 %v2667_v1  ;;  %3797 = vst [vmem:[#allocation23_spill] sm:$0xff] %v3492_v63  ;;  %3798 = vst [vmem:[#allocation24_spill] sm:$0xff] %v3498_v0  ;;  %v3504_v1 = vld [vmem:[%s3742_s5 + $0x108] sm:$0xff] }
  0x88   : > { %3799 = vst [vmem:[#allocation25_spill] sm:$0xff] %v3504_v1 }
  0x89   : > { %1210 = vmatpush2.bf16.msra.mxu0 %v2662_v2  ;;  %v3510_v2 = vld [vmem:[%s3742_s5 + $0x180] sm:$0xff] }
  0x8a   : > { %1253 = vmatpush2.bf16.msra.mxu1 %v2665_v3  ;;  %2320 = vmatprep.subr.mxu0 %v3137_v6  ;;  %3800 = vst [vmem:[#allocation26_spill] sm:$0xff] %v3510_v2  ;;  %v3516_v3 = vld [vmem:[%s3742_s5 + $0x100] sm:$0xff] }
  0x8b   : > { %2355 = vmatprep.subr.mxu1 %v3332_v36  ;;  %3801 = vst [vmem:[#allocation27_spill] sm:$0xff] %v3516_v3 }
  0x8c   : > { %1212 = vmatmul.mubr.bf16.vlgmr.msra.gmra.mxu0 %v2941_v4  ;;  %v3167_v4 = vld [vmem:[%s3742_s5 + $0x68] sm:$0xff] }
  0x8d   : > { %1255 = vmatmul.mubr.bf16.vlgmr.msra.gmra.mxu1 %v2944_v5  ;;  %2321 = vmatpush3.msra.mxu0 %v3143_v7  ;;  %v3173_v5 = vld [vmem:[%s3742_s5 + $0xe0] sm:$0xff] }
  0x8e   : > { %2322 = vmatprep.subr.mxu0 %v3148_v8  ;;  %2356 = vmatpush3.msra.mxu1 %v3338_v37 }
  0x8f   : > { %2323 = vmatpush3.msra.mxu0 %v3155_v9  ;;  %2357 = vmatprep.subr.mxu1 %v3343_v38 }
  0x90   : > { %2324 = vmatprep.subr.mxu0 %v3161_v10  ;;  %2358 = vmatpush3.msra.mxu1 %v3348_v39 }
  0x91   : > { %2325 = vmatpush3.msra.mxu0 %v3167_v4  ;;  %2359 = vmatprep.subr.mxu1 %v3354_v40 }
  0x92   : > { %2326 = vmatprep.subr.mxu0 %v3173_v5  ;;  %2360 = vmatpush3.msra.mxu1 %v3360_v41 }
  0x93   : > { %2327 = vmatpush3.msra.mxu0 %v3179_v11  ;;  %2361 = vmatprep.subr.mxu1 %v3366_v42 }
  0x94   : > { %2328 = vmatprep.subr.mxu0 %v3185_v12  ;;  %2362 = vmatpush3.msra.mxu1 %v3374_v43 }
  0x95   : > { %2329 = vmatpush3.msra.mxu0 %v3191_v13  ;;  %2363 = vmatprep.subr.mxu1 %v3380_v44 }
  0x96   : > { %2330 = vmatprep.subr.mxu0 %v3197_v14  ;;  %2364 = vmatpush3.msra.mxu1 %v3386_v45 }
  0x97   : > { %2331 = vmatpush3.msra.mxu0 %v3203_v15  ;;  %2365 = vmatprep.subr.mxu1 %v3392_v46 }
  0x98   : > { %2332 = vmatprep.subr.mxu0 %v3209_v16  ;;  %2366 = vmatpush3.msra.mxu1 %v3398_v47 }
  0x99   : > { %2333 = vmatpush3.msra.mxu0 %v3215_v17  ;;  %2367 = vmatprep.subr.mxu1 %v3404_v48 }
  0x9a   : > { %2334 = vmatprep.subr.mxu0 %v3221_v18  ;;  %2368 = vmatpush3.msra.mxu1 %v3410_v49 }
  0x9b   : > { %2335 = vmatpush3.msra.mxu0 %v3227_v19  ;;  %2369 = vmatprep.subr.mxu1 %v3416_v50 }
  0x9c   : > { %2336 = vmatprep.subr.mxu0 %v3233_v20  ;;  %2370 = vmatpush3.msra.mxu1 %v3422_v51 }
  0x9d   : > { %2337 = vmatpush3.msra.mxu0 %v3239_v21  ;;  %2371 = vmatprep.subr.mxu1 %v3428_v52 }
  0x9e   : > { %2338 = vmatprep.subr.mxu0 %v3245_v22  ;;  %2372 = vmatpush3.msra.mxu1 %v3434_v53 }
  0x9f   : > { %2339 = vmatpush3.msra.mxu0 %v3251_v23  ;;  %2373 = vmatprep.subr.mxu1 %v3440_v54 }
  0xa0   : > { %2340 = vmatprep.subr.mxu0 %v3257_v24  ;;  %2374 = vmatpush3.msra.mxu1 %v3446_v55 }
  0xa1   : > { %2341 = vmatpush3.msra.mxu0 %v3263_v25  ;;  %2375 = vmatprep.subr.mxu1 %v3452_v56 }
  0xa2   : > { %2342 = vmatprep.subr.mxu0 %v3269_v26  ;;  %2376 = vmatpush3.msra.mxu1 %v3458_v57 }
  0xa3   : > { %2343 = vmatpush3.msra.mxu0 %v3275_v27  ;;  %2377 = vmatprep.subr.mxu1 %v3464_v58 }
  0xa4   : > { %2344 = vmatprep.subr.mxu0 %v3281_v28  ;;  %2378 = vmatpush3.msra.mxu1 %v3470_v59 }
  0xa5   : > { %2345 = vmatpush3.msra.mxu0 %v3287_v29  ;;  %2379 = vmatprep.subr.mxu1 %v3476_v60 }
  0xa6   : > { %2346 = vmatprep.subr.mxu0 %v3293_v30  ;;  %2380 = vmatpush3.msra.mxu1 %v3481_v61  ;;  %v3533_v61 = vld [vmem:[%s3739_s2] sm:$0xf] }
  0xa7   : > { %2347 = vmatpush3.msra.mxu0 %v3299_v31  ;;  %2381 = vmatprep.subr.mxu1 %v3486_v62 }
  0xa8   : > { %2348 = vmatprep.subr.mxu0 %v3305_v32  ;;  %2382 = vmatpush3.msra.mxu1 %v3492_v63 }
  0xa9   : > { %2349 = vmatpush3.msra.mxu0 %v3311_v33  ;;  %2383 = vmatprep.subr.mxu1 %v3498_v0 }
  0xaa   : > { %2350 = vmatprep.subr.mxu0 %v3317_v34  ;;  %2384 = vmatpush3.msra.mxu1 %v3504_v1 }
  0xab   : > { %2351 = vmatpush3.msra.mxu0 %v3323_v35  ;;  %2385 = vmatprep.subr.mxu1 %v3510_v2 }
  0xac   : > { %2390 = vmatprep.subr.mxu0 %v3137_v6  ;;  %2386 = vmatpush3.msra.mxu1 %v3516_v3  ;;  %v413_v6 = vlaneseq }
  0xad   : > { %2425 = vmatprep.subr.mxu1 %v3332_v36 }
  0xae   : > { %v3522_v63 = vshrl.u32 %v413_v6, 7 }
  0xb0   : > { %v3525_v62 = vsub.s32 0, %v3522_v63  ;;  %v3528_v0 = vsub.s32 1, %v3522_v63 }
  0xb2   : > { %3802 = vst [vmem:[#allocation28_spill] sm:$0xff] %v3525_v62  ;;  %3803 = vst [vmem:[#allocation29_spill] sm:$0xff] %v3528_v0  ;;  %v416_v2 = vrot.slane %v3533_v61, %v3525_v62  ;;  %v420_v36 = vrot.slane %v3533_v61, %v3528_v0 }
 0x10c   : > { %v1127_v3 = vpop.f32.mrf.mxu0 }
 0x10d   : > { %v1170_v6 = vpop.f32.mrf.mxu1  ;;  %v1128_v59 = vadd.f32 %v1127_v3, %v416_v2 }
 0x10e   : > { %v1129_v1 = vpop.f32.mrf.mxu0 }
 0x10f   : > { %v1172_v60 = vpop.f32.mrf.mxu1  ;;  %v1130_v58 = vadd.f32 %v1129_v1, %v420_v36  ;;  %v3539_v53 = vadd.f32 %v1170_v6, %v1128_v59 }
 0x110   : > { %v1131_v57 = vpop.f32.mrf.mxu0 }
 0x111   : > { %v1174_v56 = vpop.f32.mrf.mxu1  ;;  %v1132_v55 = vadd.f32 %v1131_v57, %v416_v2  ;;  %v3541_v52 = vadd.f32 %v1172_v60, %v1130_v58 }
 0x112   : > { %v1133_v54 = vpop.f32.mrf.mxu0 }
 0x113   : > { %3804 = vst [vmem:[#allocation30_spill] sm:$0xff] %v3541_v52  ;;  %v3543_v51 = vadd.f32 %v1174_v56, %v1132_v55  ;;  %v1134_v62 = vadd.f32 %v1133_v54, %v420_v36  ;;  %v1176_v50 = vpop.f32.mrf.mxu1  ;;  %v1294_v1 = vmul.f32 %v3541_v52, %v3541_v52 }
 0x115   : > { %v1265_v0 = vadd.f32 %v3543_v51, %v3539_v53  ;;  %v3547_v49 = vadd.f32 %v1176_v50, %v1134_v62 }
 0x117   : > { %v1266_v3 = vrot.slane %v1265_v0, 4  ;;  %v1272_v57 = vadd.f32 %v3547_v49, %v3541_v52  ;;  %v1298_v58 = vmul.f32 %v3547_v49, %v3547_v49 }
 0x119   : > { %v1267_v59 = vadd.f32 %v1266_v3, %v1265_v0  ;;  %v1273_v55 = vrot.slane %v1272_v57, 4  ;;  %v1308_v56 = vadd.f32 %v1298_v58, %v1294_v1  ;;  %v1297_v0 = vmul.f32 %v3543_v51, %v3543_v51 }
 0x11a   : > { %v1293_v1 = vmul.f32 %v3539_v53, %v3539_v53 }
 0x11b   : > { %v1268_v54 = vrot.slane %v1267_v59, 2  ;;  %v1274_v60 = vadd.f32 %v1273_v55, %v1272_v57  ;;  %v1309_v2 = vrot.slane %v1308_v56, 4 }
 0x11d   : > { %v1269_v36 = vadd.f32 %v1268_v54, %v1267_v59  ;;  %v1275_v6 = vrot.slane %v1274_v60, 2  ;;  %v1310_v50 = vadd.f32 %v1309_v2, %v1308_v56 }
 0x11f   : > { %v1276_v62 = vadd.f32 %v1275_v6, %v1274_v60  ;;  %v1311_v48 = vrot.slane %v1310_v50, 2  ;;  %v1270_v47 = vrot.slane %v1269_v36, 1 }
 0x121   : > { %v1277_v46 = vrot.slane %v1276_v62, 1  ;;  %v1312_v45 = vadd.f32 %v1311_v48, %v1310_v50  ;;  %v1271_v52 = vadd.f32 %v1270_v47, %v1269_v36 }
 0x123   : > { %v1278_v44 = vadd.f32 %v1277_v46, %v1276_v62  ;;  %v1313_v43 = vrot.slane %v1312_v45, 1 }
 0x125   : > { %1457 = vmatprep.mubr.f32.mxu0 %v1278_v44  ;;  %v1314_v42 = vadd.f32 %v1313_v43, %v1312_v45  ;;  %v1301_v44 = vadd.f32 %v1297_v0, %v1293_v1  ;;  %v3805_v0 = vld [vmem:[#allocation2_spill] sm:$0xff]  ;;  %v3806_v1 = vld [vmem:[#allocation3_spill] sm:$0xff] }
 0x126   : > { %1458 = vmatmul.mubr.f32.vlgmr.msra.gmra.mxu0 %v1271_v52 }
 0x127   : > { %2391 = vmatpush3.msra.mxu0 %v3143_v7  ;;  %1597 = vmatprep.mubr.f32.mxu0 %v1314_v42  ;;  %v1302_v7 = vrot.slane %v1301_v44, 4 }
 0x128   : > { %2392 = vmatprep.subr.mxu0 %v3148_v8 }
 0x129   : > { %2393 = vmatpush3.msra.mxu0 %v3155_v9  ;;  %v1303_v8 = vadd.f32 %v1302_v7, %v1301_v44  ;;  %v3808_v44 = vld [vmem:[#allocation5_spill] sm:$0xff] }
 0x12a   : > { %2394 = vmatprep.subr.mxu0 %v3161_v10 }
 0x12b   : > { %2395 = vmatpush3.msra.mxu0 %v3167_v4  ;;  %v1304_v9 = vrot.slane %v1303_v8, 2 }
 0x12c   : > { %2396 = vmatprep.subr.mxu0 %v3173_v5 }
 0x12d   : > { %2397 = vmatpush3.msra.mxu0 %v3179_v11  ;;  %v1305_v10 = vadd.f32 %v1304_v9, %v1303_v8  ;;  %v3591_v11 = vsub.s32 2, %v3522_v63  ;;  %v3811_v8 = vld [vmem:[#allocation8_spill] sm:$0xff]  ;;  %v3812_v9 = vld [vmem:[#allocation9_spill] sm:$0xff] }
 0x12e   : > { %2398 = vmatprep.subr.mxu0 %v3185_v12  ;;  %v3594_v12 = vsub.s32 3, %v3522_v63 }
 0x12f   : > { %2399 = vmatpush3.msra.mxu0 %v3191_v13  ;;  %v1306_v4 = vrot.slane %v1305_v10, 1  ;;  %v424_v13 = vrot.slane %v3533_v61, %v3591_v11 }
 0x130   : > { %2400 = vmatprep.subr.mxu0 %v3197_v14  ;;  %v428_v14 = vrot.slane %v3533_v61, %v3594_v12 }
 0x131   : > { %2401 = vmatpush3.msra.mxu0 %v3203_v15  ;;  %v1307_v5 = vadd.f32 %v1306_v4, %v1305_v10  ;;  %v3814_v10 = vld [vmem:[#allocation11_spill] sm:$0xff]  ;;  %v3815_v4 = vld [vmem:[#allocation12_spill] sm:$0xff] }
 0x132   : > { %2402 = vmatprep.subr.mxu0 %v3209_v16 }
 0x133   : > { %2403 = vmatpush3.msra.mxu0 %v3215_v17 }
 0x134   : > { %2404 = vmatprep.subr.mxu0 %v3221_v18 }
 0x135   : > { %2405 = vmatpush3.msra.mxu0 %v3227_v19 }
 0x136   : > { %2406 = vmatprep.subr.mxu0 %v3233_v20 }
 0x137   : > { %2407 = vmatpush3.msra.mxu0 %v3239_v21 }
 0x138   : > { %2408 = vmatprep.subr.mxu0 %v3245_v22 }
 0x139   : > { %2409 = vmatpush3.msra.mxu0 %v3251_v23 }
 0x13a   : > { %2410 = vmatprep.subr.mxu0 %v3257_v24 }
 0x13b   : > { %2411 = vmatpush3.msra.mxu0 %v3263_v25 }
 0x13c   : > { %2412 = vmatprep.subr.mxu0 %v3269_v26 }
 0x13d   : > { %2413 = vmatpush3.msra.mxu0 %v3275_v27 }
 0x13e   : > { %2414 = vmatprep.subr.mxu0 %v3281_v28 }
 0x13f   : > { %2415 = vmatpush3.msra.mxu0 %v3287_v29 }
 0x140   : > { %2416 = vmatprep.subr.mxu0 %v3293_v30 }
 0x141   : > { %2417 = vmatpush3.msra.mxu0 %v3299_v31 }
 0x142   : > { %2418 = vmatprep.subr.mxu0 %v3305_v32 }
 0x143   : > { %2419 = vmatpush3.msra.mxu0 %v3311_v33 }
 0x144   : > { %2420 = vmatprep.subr.mxu0 %v3317_v34 }
 0x145   : > { %2421 = vmatpush3.msra.mxu0 %v3323_v35 }
 0x146   : > { %1598 = vmatmul.mubr.f32.vlgmr.msra.gmra.mxu0 %v1307_v5  ;;  %v3816_v5 = vld [vmem:[#allocation13_spill] sm:$0xff] }
 0x14c   : > { %v1213_v15 = vpop.f32.mrf.mxu0 }
 0x14d   : > { %v1256_v16 = vpop.f32.mrf.mxu1  ;;  %v1214_v19 = vadd.f32 %v1213_v15, %v424_v13  ;;  %v3818_v15 = vld [vmem:[#allocation15_spill] sm:$0xff] }
 0x14e   : > { %v1215_v17 = vpop.f32.mrf.mxu0 }
 0x14f   : > { %v1258_v18 = vpop.f32.mrf.mxu1  ;;  %v1216_v20 = vadd.f32 %v1215_v17, %v428_v14  ;;  %v3600_v25 = vadd.f32 %v1256_v16, %v1214_v19  ;;  %v3819_v16 = vld [vmem:[#allocation16_spill] sm:$0xff]  ;;  %v3820_v17 = vld [vmem:[#allocation17_spill] sm:$0xff] }
 0x150   : > { %v1217_v21 = vpop.f32.mrf.mxu0 }
 0x151   : > { %v1260_v22 = vpop.f32.mrf.mxu1  ;;  %v1218_v23 = vadd.f32 %v1217_v21, %v424_v13  ;;  %v3602_v26 = vadd.f32 %v1258_v18, %v1216_v20  ;;  %v1295_v50 = vmul.f32 %v3600_v25, %v3600_v25  ;;  %v3821_v18 = vld [vmem:[#allocation18_spill] sm:$0xff]  ;;  %v3822_v20 = vld [vmem:[#allocation19_spill] sm:$0xff]  ;;  %v3823_v21 = vld [vmem:[#allocation20_spill] sm:$0xff] }
 0x152   : > { %v1219_v24 = vpop.f32.mrf.mxu0 }
 0x153   : > { %v3604_v27 = vadd.f32 %v1260_v22, %v1218_v23  ;;  %v1220_v28 = vadd.f32 %v1219_v24, %v428_v14  ;;  %v1262_v29 = vpop.f32.mrf.mxu1  ;;  %v1296_v32 = vmul.f32 %v3602_v26, %v3602_v26  ;;  %v3817_v14 = vld [vmem:[#allocation14_spill] sm:$0xff]  ;;  %v3824_v22 = vld [vmem:[#allocation21_spill] sm:$0xff] }
 0x154   : > { %v3825_v23 = vld [vmem:[#allocation22_spill] sm:$0xff] }
 0x155   : > { %v1279_v30 = vadd.f32 %v3604_v27, %v3600_v25  ;;  %v3608_v31 = vadd.f32 %v1262_v29, %v1220_v28  ;;  %v1299_v6 = vmul.f32 %v3604_v27, %v3604_v27  ;;  %v3826_v28 = vld [vmem:[#allocation23_spill] sm:$0xff]  ;;  %v3827_v29 = vld [vmem:[#allocation24_spill] sm:$0xff] }
 0x157   : > { %v1280_v33 = vrot.slane %v1279_v30, 4  ;;  %v1286_v34 = vadd.f32 %v3608_v31, %v3602_v26  ;;  %v1300_v35 = vmul.f32 %v3608_v31, %v3608_v31  ;;  %v1315_v62 = vadd.f32 %v1299_v6, %v1295_v50 }
 0x159   : > { %v1281_v42 = vadd.f32 %v1280_v33, %v1279_v30  ;;  %v1287_v43 = vrot.slane %v1286_v34, 4  ;;  %v1322_v45 = vadd.f32 %v1300_v35, %v1296_v32  ;;  %v1316_v7 = vrot.slane %v1315_v62, 4  ;;  %v3828_v30 = vld [vmem:[#allocation25_spill] sm:$0xff]  ;;  %v3829_v32 = vld [vmem:[#allocation26_spill] sm:$0xff]  ;;  %v1692_v35 = vld [vmem:[%s3743_s6 + $0x68] sm:$0xff] }
 0x15a   : > { %1723 = vmatprep.subr.mxu0 %v1692_v35 }
 0x15b   : > { %v1282_v46 = vrot.slane %v1281_v42, 2  ;;  %v1288_v47 = vadd.f32 %v1287_v43, %v1286_v34  ;;  %v1323_v48 = vrot.slane %v1322_v45, 4  ;;  %v3830_v34 = vld [vmem:[#allocation27_spill] sm:$0xff]  ;;  %v1691_v43 = vld [vmem:[%s3743_s6 + $0x60] sm:$0xff] }
 0x15c   : > { %1724 = vmatpush1.msra.mxu0 %v1691_v43 }
 0x15d   : > { %v1283_v52 = vadd.f32 %v1282_v46, %v1281_v42  ;;  %v1289_v61 = vrot.slane %v1288_v47, 2  ;;  %v1324_v3 = vadd.f32 %v1323_v48, %v1322_v45  ;;  %v1694_v42 = vld [vmem:[%s3743_s6 + $0x78] sm:$0xff]  ;;  %v1693_v45 = vld [vmem:[%s3743_s6 + $0x70] sm:$0xff]  ;;  %v1688_v46 = vld [vmem:[%s3743_s6 + $0x48] sm:$0xff] }
 0x15e   : > { %1725 = vmatprep.subr.mxu0 %v1688_v46  ;;  %v1687_v48 = vld [vmem:[%s3743_s6 + $0x40] sm:$0xff] }
 0x15f   : > { %v1290_v57 = vadd.f32 %v1289_v61, %v1288_v47  ;;  %v1325_v58 = vrot.slane %v1324_v3, 2  ;;  %v1284_v59 = vrot.slane %v1283_v52, 1  ;;  %v1690_v47 = vld [vmem:[%s3743_s6 + $0x58] sm:$0xff]  ;;  %1726 = vmatpush1.msra.mxu0 %v1687_v48  ;;  %v1684_v61 = vld [vmem:[%s3743_s6 + $0x28] sm:$0xff] }
 0x160   : > { %1727 = vmatprep.subr.mxu0 %v1684_v61 }
 0x161   : > { %v1291_v55 = vrot.slane %v1290_v57, 1  ;;  %v1326_v56 = vadd.f32 %v1325_v58, %v1324_v3  ;;  %v1285_v2 = vadd.f32 %v1284_v59, %v1283_v52  ;;  %v1689_v52 = vld [vmem:[%s3743_s6 + $0x50] sm:$0xff]  ;;  %v1686_v3 = vld [vmem:[%s3743_s6 + $0x38] sm:$0xff]  ;;  %v1680_v59 = vld [vmem:[%s3743_s6 + $0x8] sm:$0xff] }
 0x162   : > { %v1685_v58 = vld [vmem:[%s3743_s6 + $0x30] sm:$0xff] }
 0x163   : > { %v1292_v54 = vadd.f32 %v1291_v55, %v1290_v57  ;;  %v1327_v60 = vrot.slane %v1326_v56, 1  ;;  %v1683_v57 = vld [vmem:[%s3743_s6 + $0x20] sm:$0xff]  ;;  %v1682_v55 = vld [vmem:[%s3743_s6 + $0x18] sm:$0xff] }
 0x164   : > { %1728 = vmatpush1.msra.mxu0 %v1683_v57 }
 0x165   : > { %1527 = vmatprep.mubr.f32.mxu1 %v1292_v54  ;;  %v1328_v36 = vadd.f32 %v1327_v60, %v1326_v56  ;;  %v1679_v56 = vld [vmem:[%s3743_s6] sm:$0xff]  ;;  %1729 = vmatprep.subr.mxu0 %v1680_v59  ;;  %v1681_v54 = vld [vmem:[%s3743_s6 + $0x10] sm:$0xff]  ;;  %v2678_v60 = vmov 0.0  }
 0x166   : > { %1528 = vmatmul.mubr.f32.vlgmr.msra.gmra.mxu1 %v1285_v2  ;;  %1730 = vmatpush1.msra.mxu0 %v1679_v56 }
 0x167   : > { %2426 = vmatpush3.msra.mxu1 %v3338_v37  ;;  %1667 = vmatprep.mubr.f32.mxu1 %v1328_v36  ;;  %v3807_v37 = vld [vmem:[#allocation4_spill] sm:$0xff] }
 0x168   : > { %2427 = vmatprep.subr.mxu1 %v3343_v38  ;;  %v3809_v38 = vld [vmem:[#allocation6_spill] sm:$0xff]  ;;  %1763 = vmatprep.mubr.f32.mxu0 %v2678_v60 }
 0x169   : > { %2428 = vmatpush3.msra.mxu1 %v3348_v39  ;;  %v3810_v39 = vld [vmem:[#allocation7_spill] sm:$0xff]  ;;  %1868 = vmatprep.subr.mxu0 %v1692_v35 }
 0x16a   : > { %2429 = vmatprep.subr.mxu1 %v3354_v40  ;;  %v1317_v40 = vadd.f32 %v1316_v7, %v1315_v62 }
 0x16b   : > { %2430 = vmatpush3.msra.mxu1 %v3360_v41  ;;  %v3813_v41 = vld [vmem:[#allocation10_spill] sm:$0xff] }
 0x16c   : > { %2431 = vmatprep.subr.mxu1 %v3805_v0  ;;  %v1318_v13 = vrot.slane %v1317_v40, 2 }
 0x16d   : > { %2432 = vmatpush3.msra.mxu1 %v3806_v1 }
 0x16e   : > { %2433 = vmatprep.subr.mxu1 %v3807_v37  ;;  %v1319_v19 = vadd.f32 %v1318_v13, %v1317_v40 }
 0x16f   : > { %2434 = vmatpush3.msra.mxu1 %v3808_v44 }
 0x170   : > { %2435 = vmatprep.subr.mxu1 %v3809_v38  ;;  %v1320_v24 = vrot.slane %v1319_v19, 1 }
 0x171   : > { %2436 = vmatpush3.msra.mxu1 %v3810_v39 }
 0x172   : > { %2437 = vmatprep.subr.mxu1 %v3811_v8  ;;  %v1321_v33 = vadd.f32 %v1320_v24, %v1319_v19 }
 0x173   : > { %2438 = vmatpush3.msra.mxu1 %v3812_v9 }
 0x174   : > { %2439 = vmatprep.subr.mxu1 %v3813_v41 }
 0x175   : > { %2440 = vmatpush3.msra.mxu1 %v3814_v10 }
 0x176   : > { %2441 = vmatprep.subr.mxu1 %v3815_v4 }
 0x177   : > { %2442 = vmatpush3.msra.mxu1 %v3816_v5 }
 0x178   : > { %2443 = vmatprep.subr.mxu1 %v3817_v14 }
 0x179   : > { %2444 = vmatpush3.msra.mxu1 %v3818_v15 }
 0x17a   : > { %2445 = vmatprep.subr.mxu1 %v3819_v16  ;;  %v1986_v16 = vld [vmem:[%s3740_s3] sm:$0xf] }
 0x17b   : > { %2446 = vmatpush3.msra.mxu1 %v3820_v17  ;;  %v2679_v17 = vmov 1966171168  }
 0x17c   : > { %2447 = vmatprep.subr.mxu1 %v3821_v18  ;;  %v2024_v18 = vunpack.c.l.s4 %v2679_v17 }
 0x17d   : > { %2448 = vmatpush3.msra.mxu1 %v3822_v20 }
 0x17e   : > { %2449 = vmatprep.subr.mxu1 %v3823_v21  ;;  %v3831_v21 = vld [vmem:[#allocation28_spill] sm:$0xff] }
 0x17f   : > { %2450 = vmatpush3.msra.mxu1 %v3824_v22  ;;  %v1991_v22 = vrot.slane %v1986_v16, %v3831_v21 }
 0x180   : > { %2451 = vmatprep.subr.mxu1 %v3825_v23  ;;  %v1999_v23 = vrot.slane %v1986_v16, %v3591_v11 }
 0x181   : > { %2452 = vmatpush3.msra.mxu1 %v3826_v28 }
 0x182   : > { %2453 = vmatprep.subr.mxu1 %v3827_v29  ;;  %v3832_v29 = vld [vmem:[#allocation29_spill] sm:$0xff] }
 0x183   : > { %2454 = vmatpush3.msra.mxu1 %v3828_v30  ;;  %v1995_v30 = vrot.slane %v1986_v16, %v3832_v29 }
 0x184   : > { %2455 = vmatprep.subr.mxu1 %v3829_v32  ;;  %v2003_v32 = vrot.slane %v1986_v16, %v3594_v12 }
 0x185   : > { %2456 = vmatpush3.msra.mxu1 %v3830_v34 }
 0x186   : > { %1668 = vmatmul.mubr.f32.vlgmr.msra.gmra.mxu1 %v1321_v33  ;;  %1794 = vmatprep.subr.mxu1 %v1694_v42  ;;  %v2025_v33 = vunpack.c.0.s8 %v2024_v18 }
 0x187   : > { %1795 = vmatpush1.msra.mxu1 %v1693_v45  ;;  %1834 = vmatprep.mubr.f32.mxu1 %v2678_v60 }
 0x188   : > { %1796 = vmatprep.subr.mxu1 %v1690_v47 }
 0x189   : > { %1797 = vmatpush1.msra.mxu1 %v1689_v52 }
 0x18a   : > { %1798 = vmatprep.subr.mxu1 %v1686_v3 }
 0x18b   : > { %1799 = vmatpush1.msra.mxu1 %v1685_v58 }
 0x18c   : > { %1800 = vmatprep.subr.mxu1 %v1682_v55 }
 0x18d   : > { %1801 = vmatpush1.msra.mxu1 %v1681_v54 }
 0x18e   : > { %1939 = vmatprep.subr.mxu1 %v1694_v42 }
 0x1e6   : > { %v2352_v2 = vpop.f32.mrf.mxu0 }
 0x1e8   : > { %v2353_v36 = vpop.f32.mrf.mxu0 }
 0x1e9   : > { %v2354_v62 = vadd.f32 %v2353_v36, %v2352_v2 }
 0x206   : > { %v2422_v44 = vpop.f32.mrf.mxu0 }
 0x208   : > { %v2423_v7 = vpop.f32.mrf.mxu0 }
 0x209   : > { %v2424_v8 = vadd.f32 %v2423_v7, %v2422_v44 }
 0x226   : > { %v2387_v6 = vpop.f32.mrf.mxu1 }
 0x228   : > { %v2388_v50 = vpop.f32.mrf.mxu1 }
 0x229   : > { %v2389_v0 = vadd.f32 %v2388_v50, %v2387_v6 }
 0x22b   : > { %v1530_v1 = vadd.f32 %v2389_v0, %v2354_v62 }
 0x22d   : > { %v1673_v37 = vmul.f32 0.00390625, %v1530_v1  ;;  %v3833_v1 = vld [vmem:[#allocation30_spill] sm:$0xff] }
 0x22f   : > { %2312 = vmatmul.mubr.msk.f32.vlgmr.msra.gmra.mxu0 %vm1695_vm0, %v1673_v37  ;;  %2313 = vmatmul.mubr.msk.f32.vlgmr.msra.gmra.mxu1 %vm1695_vm0, %v1673_v37  ;;  %v1675_v10 = vmul.f32 %v1673_v37, %v1673_v37 }
 0x230   : > { %1869 = vmatpush1.msra.mxu0 %v1691_v43  ;;  %1940 = vmatpush1.msra.mxu1 %v1693_v45 }
 0x231   : > { %1870 = vmatprep.subr.mxu0 %v1688_v46  ;;  %1941 = vmatprep.subr.mxu1 %v1690_v47  ;;  %v2028_v47 = vsub.s32 %v2025_v33, %v3522_v63  ;;  %v2012_v63 = vld [vmem:[%s3741_s4] sm:$0xf] }
 0x232   : > { %1871 = vmatpush1.msra.mxu0 %v1687_v48  ;;  %1942 = vmatpush1.msra.mxu1 %v1689_v52 }
 0x233   : > { %1872 = vmatprep.subr.mxu0 %v1684_v61  ;;  %1943 = vmatprep.subr.mxu1 %v1686_v3 }
 0x234   : > { %1873 = vmatpush1.msra.mxu0 %v1683_v57  ;;  %1944 = vmatpush1.msra.mxu1 %v1685_v58 }
 0x235   : > { %1874 = vmatprep.subr.mxu0 %v1680_v59  ;;  %1945 = vmatprep.subr.mxu1 %v1682_v55 }
 0x236   : > { %1875 = vmatpush1.msra.mxu0 %v1679_v56  ;;  %1908 = vmatprep.mubr.f32.mxu0 %v2678_v60 }
 0x237   : > { %1946 = vmatpush1.msra.mxu1 %v1681_v54  ;;  %1979 = vmatprep.mubr.f32.mxu1 %v2678_v60 }
 0x246   : > { %v2457_v38 = vpop.f32.mrf.mxu1 }
 0x248   : > { %v2458_v39 = vpop.f32.mrf.mxu1 }
 0x249   : > { %v2459_v9 = vadd.f32 %v2458_v39, %v2457_v38 }
 0x24b   : > { %v1670_v40 = vadd.f32 %v2459_v9, %v2424_v8 }
 0x24d   : > { %v1674_v41 = vmul.f32 0.00390625, %v1670_v40 }
 0x24f   : > { %v1676_v4 = vsub.f32 %v1674_v41, %v1675_v10 }
 0x251   : > { %v1677_v5 = vadd.f32 1e-05, %v1676_v4 }
 0x253   : > { %2668 = vrsqrt.f32 %v1677_v5 }
 0x260   : > { %v2669_v13 = vpop.eup %2668 }
 0x261   : > { %2314 = vmatmul.mubr.msk.f32.vlgmr.msra.gmra.mxu0 %vm1695_vm0, %v2669_v13  ;;  %2315 = vmatmul.mubr.msk.f32.vlgmr.msra.gmra.mxu1 %vm1695_vm0, %v2669_v13 }
 0x2ef   : > { %v1765_v14 = vpop.f32.mrf.mxu0  ;;  %v1836_v15 = vpop.f32.mrf.mxu1 }
 0x2f1   : > { %v1767_v19 = vpop.f32.mrf.mxu0  ;;  %v1838_v20 = vpop.f32.mrf.mxu1 }
 0x321   : > { %v1910_v24 = vpop.f32.mrf.mxu0  ;;  %v1981_v28 = vpop.f32.mrf.mxu1 }
 0x322   : > { %v2008_v34 = vmul.f32 %v1991_v22, %v1910_v24  ;;  %v2010_v35 = vmul.f32 %v1999_v23, %v1981_v28 }
 0x323   : > { %v1912_v42 = vpop.f32.mrf.mxu0  ;;  %v1983_v43 = vpop.f32.mrf.mxu1 }
 0x324   : > { %v2009_v45 = vmul.f32 %v1995_v30, %v1912_v42  ;;  %v2011_v46 = vmul.f32 %v2003_v32, %v1983_v43  ;;  %v2013_v48 = vmul.f32 %v2008_v34, %v1765_v14  ;;  %v2015_v52 = vmul.f32 %v2010_v35, %v1836_v15 }
 0x325   : > { %v2050_v54 = vrot.slane %v2008_v34, %v3831_v21  ;;  %v2058_v60 = vrot.slane %v2010_v35, %v3831_v21 }
 0x326   : > { %v2014_v61 = vmul.f32 %v2009_v45, %v1767_v19  ;;  %v2016_v3 = vmul.f32 %v2011_v46, %v1838_v20  ;;  %v2054_v2 = vrot.slane %v2009_v45, %v3831_v21  ;;  %v2062_v36 = vrot.slane %v2011_v46, %v3831_v21 }
 0x327   : > { %v2063_v62 = vmul.f32 %v2050_v54, %v3539_v53  ;;  %v2065_v0 = vmul.f32 %v2058_v60, %v3600_v25  ;;  %v2067_v9 = vmul.f32 %v2050_v54, %v3543_v51  ;;  %v2069_v40 = vmul.f32 %v2058_v60, %v3604_v27 }
 0x328   : > { %v2021_v57 = vcombine.low %v2013_v48, %v2014_v61  ;;  %v2022_v58 = vcombine.low %v2015_v52, %v2016_v3  ;;  %v2064_v37 = vmul.f32 %v2054_v2, %v3833_v1  ;;  %v2066_v44 = vmul.f32 %v2062_v36, %v3602_v26 }
 0x329   : > { %v2068_v53 = vmul.f32 %v2054_v2, %v3547_v49  ;;  %v2070_v25 = vmul.f32 %v2062_v36, %v3608_v31 }
 0x32a   : > { %v2029_v59 = vrot.slane %v2021_v57, %v2028_v47  ;;  %v2036_v55 = vrot.slane %v2022_v58, %v2028_v47 }
 0x32c   : > { %v2037_v56 = vcombine.low %v2029_v59, %v2036_v55 }
 0x32e   : > { %v2044_v6 = vrot.slane %v2037_v56, %v2028_v47 }
 0x330   : > { %v2046_v50 = vsub.f32 %v2012_v63, %v2044_v6 }
 0x332   : > { %v2075_v7 = vrot.slane %v2046_v50, %v3831_v21  ;;  %v2079_v38 = vrot.slane %v2046_v50, %v3832_v29  ;;  %v2083_v39 = vrot.slane %v2046_v50, %v3591_v11  ;;  %v2087_v8 = vrot.slane %v2046_v50, %v3594_v12 }
 0x334   : > { %v2092_v41 = vadd.f32 %v2075_v7, %v2063_v62  ;;  %v2093_v10 = vadd.f32 %v2079_v38, %v2064_v37  ;;  %v2094_v26 = vadd.f32 %v2083_v39, %v2065_v0  ;;  %v2095_v4 = vadd.f32 %v2087_v8, %v2066_v44 }
 0x335   : > { %v2096_v5 = vadd.f32 %v2075_v7, %v2067_v9  ;;  %v2097_v11 = vadd.f32 %v2079_v38, %v2068_v53  ;;  %v2098_v13 = vadd.f32 %v2083_v39, %v2069_v40  ;;  %v2099_v12 = vadd.f32 %v2087_v8, %v2070_v25 }
 0x336   : > { %v2100_v14 = vmax.f32 %v2092_v41, 0.0  ;;  %v2101_v51 = vmax.f32 %v2093_v10, 0.0  ;;  %v2102_v15 = vmax.f32 %v2094_v26, 0.0  ;;  %v2103_v27 = vmax.f32 %v2095_v4, 0.0 }
 0x337   : > { %v2104_v16 = vmax.f32 %v2096_v5, 0.0  ;;  %v2105_v49 = vmax.f32 %v2097_v11, 0.0  ;;  %v2106_v17 = vmax.f32 %v2098_v13, 0.0  ;;  %v2107_v31 = vmax.f32 %v2099_v12, 0.0 }
 0x338   : > { %2108 = vst [vmem:[%s278_s13] sm:$0xff] %v2100_v14  ;;  %2109 = vst [vmem:[%s278_s13 + $0x8] sm:$0xff] %v2101_v51 }
 0x339   : > { %2110 = vst [vmem:[%s278_s13 + $0x10] sm:$0xff] %v2102_v15  ;;  %2111 = vst [vmem:[%s278_s13 + $0x18] sm:$0xff] %v2103_v27 }
 0x33a   : > { %2112 = vst [vmem:[%s278_s13 + $0x20] sm:$0xff] %v2104_v16  ;;  %2113 = vst [vmem:[%s278_s13 + $0x28] sm:$0xff] %v2105_v49 }
 0x33b   : > { %2114 = vst [vmem:[%s278_s13 + $0x30] sm:$0xff] %v2106_v17  ;;  %2115 = vst [vmem:[%s278_s13 + $0x38] sm:$0xff] %v2107_v31 }
 0x33c PF: > { %s17_s24 = sadd.s32 1, %s2676_s24  }
 0x33d   : > { %p14_p4 = scmp.ge.s32.totalorder %s17_s24, 4  }
 0x33f   :  { %16 = sbr.rel (!%p14_p4) target bundleno = 1 (0x1), region = 78 }

</bundles_post_ra>
